<compile_context>
chip_gen: v7x
topology: tpu7x:2x2x1
jax: 0.10.0
libtpu: 0.0.40
codegen_flags: <defaults>
</compile_context>

<pallas_src>
import functools

import jax
import jax.numpy as jnp
from jax.experimental import pallas as pl
from jax.experimental.pallas import tpu as pltpu


def _round_up(x, m):
    return (x + m - 1) // m * m


# ----------------------------- Pallas kernels ------------------------------ #

def _conv_lrelu_pool_kernel(p_ref, w_ref, b_ref, o_ref, *, neg_slope, n_pool, t_m):
    """Fused conv (transposed im2col matmul) + 2x2 maxpool + bias + LeakyReLU.

    p_ref: (Kdim, n_pool*t_m) bf16 — 4 pool candidates side by side in
           t_m-aligned lane chunks (chunk c = candidate c of this tile's columns).
    w_ref: (Cout, Kdim) bf16
    b_ref: (Cout, 1)    f32
    o_ref: (Cout, t_m)  bf16 — pooled output, M (=B*Hp*Wp) on the lane axis.
    """
    # One MXU contraction (single weight push) for all 4 pool candidates.
    y = jnp.dot(w_ref[...], p_ref[...], preferred_element_type=jnp.float32)
    # 2x2 maxpool = elementwise max over 4 lane chunks at multiples of t_m (128-aligned).
    out = y[:, 0:t_m]
    for c in range(1, n_pool):
        out = jnp.maximum(out, y[:, c * t_m:(c + 1) * t_m])
    # Bias + LeakyReLU once, after the max (bit-identical to per-candidate form).
    out = out + b_ref[...]
    out = jnp.where(out >= 0, out, neg_slope * out)
    o_ref[...] = out.astype(o_ref.dtype)


def _conv_pool_head_kernel(p_ref, w2_ref, b2_ref, w3e_ref, sel_ref, b3_ref,
                           o_ref, *, neg_slope):
    """Fused conv2 + 2x2 maxpool + bias + LeakyReLU + full-map 'naive' head conv.

    p_ref  : (4, Kdim, SB) bf16, SB = n_spatial*batch, columns ordered (hp, wp, b).
    w2_ref : (C2, Kdim) bf16 ;  b2_ref: (C2, 1) f32
    w3e_ref: (NC, C2, SB) f32 — head weight replicated over batch along lanes:
             w3e[nc, c2, s*B + b] = w3[nc, c2, sh, sw],  s = sh*W + sw.
    sel_ref: (SB, batch) f32 — 0/1 phase selector, sel[s*B + b, b'] = (b == b').
    b3_ref : (NC, 1) f32
    o_ref  : (NC, batch) f32
    """
    w2 = w2_ref[...]
    y = jnp.dot(w2, p_ref[0], preferred_element_type=jnp.float32)
    y = jnp.maximum(y, jnp.dot(w2, p_ref[1], preferred_element_type=jnp.float32))
    y = jnp.maximum(y, jnp.dot(w2, p_ref[2], preferred_element_type=jnp.float32))
    y = jnp.maximum(y, jnp.dot(w2, p_ref[3], preferred_element_type=jnp.float32))
    y = y + b2_ref[...]
    pooled = jnp.where(y >= 0, y, neg_slope * y)             # (C2, SB) f32

    # Head conv: its 6x6 kernel covers the whole pooled map, so it is one
    # (channel, spatial) contraction.  Relayout-free single pass:
    #   t[nc, j]   = sum_c2  w3e[nc, c2, j] * pooled[c2, j]   (VPU mul + sublane reduce)
    #   out[nc, b] = sum_j   t[nc, j] * sel[j, b]             (one tiny MXU dot)
    t = jnp.sum(w3e_ref[...] * pooled[None, :, :], axis=1)   # (NC, SB)
    out = jnp.dot(t, sel_ref[...], preferred_element_type=jnp.float32)
    o_ref[...] = (out + b3_ref[...]).astype(o_ref.dtype)


# ------------------------------ layer wrappers ----------------------------- #

def _pool_patches_T(x_cbhw, ksize, stride, order):
    """Transposed, pool-grouped im2col (XLA glue), dtype-preserving (bf16 in/out).

    x_cbhw: activation in channel-first (Cin, B, H, W) layout.
    Returns (patches, Hp, Wp); patches has shape (4, K*K*Cin, B*Hp*Wp):
      axis 0: the 4 candidates of each 2x2 maxpool window of the conv output,
      axis 1: patch row (ki*K + kj)*Cin + ci,
      axis 2: pooled output position, (b, hp, wp) for "bhw", (hp, wp, b) for "hwb".
    """
    Cin, B, H, W = x_cbhw.shape
    Ho = (H - ksize) // stride + 1
    Wo = (W - ksize) // stride + 1
    Hp, Wp = Ho // 2, Wo // 2
    parts = []
    for i in range(ksize):
        for j in range(ksize):
            parts.append(
                x_cbhw[:, :, i:i + stride * Ho:stride, j:j + stride * Wo:stride])
    p = jnp.stack(parts, axis=0)                        # (K*K, Cin, B, Ho, Wo)
    p = p[:, :, :, :2 * Hp, :2 * Wp]
    p = p.reshape(ksize * ksize, Cin, B, Hp, 2, Wp, 2)   # (kk,ci,b,hp,dr,wp,dc)
    if order == "bhw":
        p = jnp.transpose(p, (4, 6, 0, 1, 2, 3, 5))      # (dr,dc,kk,ci,b,hp,wp)
    elif order == "hwb":
        p = jnp.transpose(p, (4, 6, 0, 1, 3, 5, 2))      # (dr,dc,kk,ci,hp,wp,b)
    else:
        raise ValueError(order)
    return p.reshape(4, ksize * ksize * Cin, B * Hp * Wp), Hp, Wp


def _oihw_to_matT(w):
    """(Cout, Cin, K, K) -> (Cout, K*K*Cin), column = (ki*K + kj)*Cin + ci."""
    return jnp.transpose(w, (0, 2, 3, 1)).reshape(w.shape[0], -1)


def conv_lrelu_pool(p, w, b, *, neg_slope, tile_m=768):
    """Fused conv + 2x2 maxpool + bias + LeakyReLU.  Returns (Cout, Mp) bf16."""
    n_pool, kdim, mp = p.shape
    cout = w.shape[0]
    t_m = min(tile_m, _round_up(mp, 128))
    mpad = _round_up(mp, t_m)
    if mpad != mp:                      # pad M so the lane-axis grid tiles evenly
        p = jnp.pad(p, ((0, 0), (0, 0), (0, mpad - mp)))
    nblk = mpad // t_m

    # Re-block so each grid tile is one contiguous (kdim, 4*t_m) lane slab with the
    # 4 pool candidates in adjacent, t_m-aligned chunks (column = m*4*t_m + c*t_m + j).
    pm = p.reshape(n_pool, kdim, nblk, t_m)
    pm = jnp.transpose(pm, (1, 2, 0, 3)).reshape(kdim, nblk * n_pool * t_m)

    out = pl.pallas_call(
        functools.partial(_conv_lrelu_pool_kernel, neg_slope=neg_slope,
                          n_pool=n_pool, t_m=t_m),
        out_shape=jax.ShapeDtypeStruct((cout, mpad), jnp.bfloat16),
        grid=(nblk,),
        in_specs=[
            pl.BlockSpec((kdim, n_pool * t_m), lambda m: (0, m)),
            pl.BlockSpec((cout, kdim), lambda m: (0, 0)),
            pl.BlockSpec((cout, 1), lambda m: (0, 0)),
        ],
        out_specs=pl.BlockSpec((cout, t_m), lambda m: (0, m)),
        compiler_params=pltpu.CompilerParams(
            dimension_semantics=("parallel",)),
    )(pm, w, b)
    return out[:, :mp]


def conv_lrelu_pool_head(p, w2, b2, w3e, sel, b3, *, neg_slope):
    """Fused conv2 + maxpool + LeakyReLU + full-map head conv.  Returns (NC, batch)."""
    n_pool, kdim, sb = p.shape
    c2 = w2.shape[0]
    nc = w3e.shape[0]
    batch = sel.shape[1]

    return pl.pallas_call(
        functools.partial(_conv_pool_head_kernel, neg_slope=neg_slope),
        out_shape=jax.ShapeDtypeStruct((nc, batch), jnp.float32),
        grid=(1,),
        in_specs=[
            pl.BlockSpec((n_pool, kdim, sb), lambda i: (0, 0, 0)),
            pl.BlockSpec((c2, kdim), lambda i: (0, 0)),
            pl.BlockSpec((c2, 1), lambda i: (0, 0)),
            pl.BlockSpec((nc, c2, sb), lambda i: (0, 0, 0)),
            pl.BlockSpec((sb, batch), lambda i: (0, 0)),
            pl.BlockSpec((nc, 1), lambda i: (0, 0)),
        ],
        out_specs=pl.BlockSpec((nc, batch), lambda i: (0, 0)),
        compiler_params=pltpu.CompilerParams(
            dimension_semantics=("arbitrary",)),
    )(p, w2, b2, w3e, sel, b3)


# --------------------------------- model ----------------------------------- #

def init_params(key, num_classes):
    """Deterministic PyTorch-style uniform(-1/sqrt(fan_in), 1/sqrt(fan_in))."""
    def conv_init(k, cout, cin, ksize):
        kw, kb = jax.random.split(k)
        bound = 1.0 / (cin * ksize * ksize) ** 0.5
        w = jax.random.uniform(kw, (cout, cin, ksize, ksize), jnp.float32,
                               -bound, bound)
        b = jax.random.uniform(kb, (cout,), jnp.float32, -bound, bound)
        return w, b

    k1, k2, k3 = jax.random.split(key, 3)
    w1, b1 = conv_init(k1, 16, 1, 8)            # conv1: Conv2d(1, 16, 8, stride=2)
    w2, b2 = conv_init(k2, 32, 16, 4)           # conv2: Conv2d(16, 32, 4, stride=2)
    w3, b3 = conv_init(k3, num_classes, 32, 6)  # naive: Conv2d(32, NC, 6, stride=1)
    return dict(w1=w1, b1=b1, w2=w2, b2=b2, w3=w3, b3=b3)


def cnn_forward(params, x_nchw):
    """Matches CNN.forward: conv1 -> lrelu -> pool -> conv2 -> lrelu -> pool -> naive."""
    f32, bf16 = jnp.float32, jnp.bfloat16
    B = x_nchw.shape[0]

    # ---- stage 1: conv1(1->16, k8, s2) + MaxPool(2,2) + bias + LeakyReLU(0.1) ----
    # Cast to bf16 BEFORE the im2col glue so all glue HBM traffic is half-width.
    x1 = jnp.transpose(x_nchw, (1, 0, 2, 3)).astype(bf16)       # (Cin, B, H, W)
    p1, hp1, wp1 = _pool_patches_T(x1, 8, 2, order="bhw")
    pooled1 = conv_lrelu_pool(
        p1,
        _oihw_to_matT(params["w1"]).astype(bf16),
        params["b1"].reshape(-1, 1).astype(f32),
        neg_slope=0.1)                                          # (C1, Mp1) bf16
    c1 = params["w1"].shape[0]
    x2 = pooled1.reshape(c1, B, hp1, wp1)                       # channel-first, bf16

    # ---- stage 2+3: conv2 + pool + LeakyReLU + naive head conv (fused) ----
    p2, hp2, wp2 = _pool_patches_T(x2, 4, 2, order="hwb")       # bf16
    nc, c2, kh, kw = params["w3"].shape
    assert (kh, kw) == (hp2, wp2), (
        "fused head conv assumes the naive conv kernel covers the full pooled "
        f"feature map: kernel {(kh, kw)} vs map {(hp2, wp2)}")
    n_spatial = kh * kw
    # Head weight replicated over batch along lanes + 0/1 phase-selection matrix
    # (both built once at trace time; lane-dense, no (36,10,32) padded blob).
    w3e = jnp.repeat(params["w3"].reshape(nc, c2, n_spatial).astype(f32), B, axis=2)
    sel = jnp.tile(jnp.eye(B, dtype=f32), (n_spatial, 1))       # (n_spatial*B, B)
    out_t = conv_lrelu_pool_head(
        p2,
        _oihw_to_matT(params["w2"]).astype(bf16),
        params["b2"].reshape(-1, 1).astype(f32),
        w3e, sel,
        params["b3"].reshape(-1, 1).astype(f32),
        neg_slope=0.1)                                          # (NC, B) f32
    return jnp.transpose(out_t, (1, 0)).reshape(B, nc, 1, 1)    # NCHW output
    # (self.soft = Softmax2d() is defined in __init__ but never used in forward.)


# ------------------------- pure-JAX reference (check) ----------------------- #

def _conv_ref(x, w, b, stride, *, bf16_inputs):
    if bf16_inputs:   # matches the kernel's bf16 matmul inputs / f32 accumulation
        x = x.astype(jnp.bfloat16)
        w = w.astype(jnp.bfloat16)
    y = jax.lax.conv_general_dilated(
        x, w, (stride, stride), "VALID",
        dimension_numbers=("NCHW", "OIHW", "NCHW"),
        preferred_element_type=jnp.float32)
    return y + b.reshape(1, -1, 1, 1)


def _cnn_ref(params, x):
    lrelu = lambda t: jnp.where(t >= 0, t, 0.1 * t)
    pool = lambda t: jax.lax.reduce_window(
        t, -jnp.inf, jax.lax.max, (1, 1, 2, 2), (1, 1, 2, 2), "VALID")
    x = pool(lrelu(_conv_ref(x, params["w1"], params["b1"], 2, bf16_inputs=True)))
    x = pool(lrelu(_conv_ref(x, params["w2"], params["b2"], 2, bf16_inputs=True)))
    return _conv_ref(x, params["w3"], params["b3"], 1, bf16_inputs=False)


# ----------------------------------- main ----------------------------------- #

if __name__ == "__main__":
    num_classes = 10
    key = jax.random.PRNGKey(0)
    kx, kp = jax.random.split(key)

    # Smallest spatial size that survives conv(8,s2)->pool->conv(4,s2)->pool->conv(6,s1)
    # is 110x110 (final feature map 6x6 -> 1x1 output).
    x = jax.random.normal(kx, (2, 1, 110, 110), dtype=jnp.float32)
    params = init_params(kp, num_classes)

    fwd = jax.jit(cnn_forward)
    out = jax.block_until_ready(fwd(params, x))
    assert out.shape == (2, num_classes, 1, 1), out.shape
    assert bool(jnp.all(jnp.isfinite(out)))

    ref = jax.block_until_ready(_cnn_ref(params, x))
    # Tolerance reflects the intentional bf16 matmul inputs (reference uses the
    # same quantization points); layout/indexing bugs would blow far past this.
    err = float(jnp.max(jnp.abs(out - ref)))
    assert jnp.allclose(out, ref, rtol=1e-2, atol=1e-2), err

    print("KERNEL_OK")
</pallas_src>

<mosaic_0001>
module attributes {stable_mosaic.version = 11 : i64} {
  func.func @_conv_lrelu_pool_kernel(%arg0: i32, %arg1: memref<64x3072xbf16, #tpu.memory_space<vmem>>, %arg2: memref<16x64xbf16, #tpu.memory_space<vmem>>, %arg3: memref<16x1xf32, #tpu.memory_space<vmem>>, %arg4: memref<16x768xbf16, #tpu.memory_space<vmem>>) attributes {dimension_semantics = [#tpu.dimension_semantics<parallel>], iteration_bounds = array<i64: 2>, scalar_prefetch = 0 : i64, scratch_operands = 0 : i64, tpu.core_type = #tpu.core_type<tc>, window_params = [{transform_indices = @transform_0, window_bounds = array<i64: 64, 3072>}, {pipeline_mode = #tpu.pipeline_mode<synchronous>, transform_indices = @transform_1, window_bounds = array<i64: 16, 64>}, {pipeline_mode = #tpu.pipeline_mode<synchronous>, transform_indices = @transform_2, window_bounds = array<i64: 16, 1>}, {transform_indices = @transform_3, window_bounds = array<i64: 16, 768>}]} {
    %c0 = arith.constant 0 : index
    %c0_0 = arith.constant 0 : index
    %0 = vector.load %arg2[%c0, %c0_0] : memref<16x64xbf16, #tpu.memory_space<vmem>>, vector<16x64xbf16>
    %c0_1 = arith.constant 0 : index
    %c0_2 = arith.constant 0 : index
    %1 = vector.load %arg1[%c0_1, %c0_2] : memref<64x3072xbf16, #tpu.memory_space<vmem>>, vector<64x3072xbf16>
    %cst = arith.constant dense<0.000000e+00> : vector<16x3072xf32>
    %2 = tpu.matmul %0, %1, %cst {dimension_numbers = #tpu.dot_dimension_numbers<[1], [0], [0], [1], [0, 0, 1, 1], [], []>} : vector<16x64xbf16>, vector<64x3072xbf16>, vector<16x3072xf32> -> vector<16x3072xf32>
    %3 = vector.extract_strided_slice %2 {offsets = [0, 0], sizes = [16, 768], strides = [1, 1]} : vector<16x3072xf32> to vector<16x768xf32>
    %4 = vector.extract_strided_slice %2 {offsets = [0, 768], sizes = [16, 768], strides = [1, 1]} : vector<16x3072xf32> to vector<16x768xf32>
    %5 = arith.maximumf %3, %4 : vector<16x768xf32>
    %6 = vector.extract_strided_slice %2 {offsets = [0, 1536], sizes = [16, 768], strides = [1, 1]} : vector<16x3072xf32> to vector<16x768xf32>
    %7 = arith.maximumf %5, %6 : vector<16x768xf32>
    %8 = vector.extract_strided_slice %2 {offsets = [0, 2304], sizes = [16, 768], strides = [1, 1]} : vector<16x3072xf32> to vector<16x768xf32>
    %9 = arith.maximumf %7, %8 : vector<16x768xf32>
    %c0_3 = arith.constant 0 : index
    %c0_4 = arith.constant 0 : index
    %10 = vector.load %arg3[%c0_3, %c0_4] : memref<16x1xf32, #tpu.memory_space<vmem>>, vector<16x1xf32>
    %11 = vector.broadcast %10 : vector<16x1xf32> to vector<16x768xf32>
    %12 = arith.addf %9, %11 : vector<16x768xf32>
    %cst_5 = arith.constant 0.000000e+00 : f32
    %13 = vector.broadcast %cst_5 : f32 to vector<16x768xf32>
    %14 = arith.cmpf oge, %12, %13 : vector<16x768xf32>
    %cst_6 = arith.constant 1.000000e-01 : f32
    %15 = vector.broadcast %cst_6 : f32 to vector<16x768xf32>
    %16 = arith.mulf %15, %12 : vector<16x768xf32>
    %17 = arith.select %14, %12, %16 : vector<16x768xi1>, vector<16x768xf32>
    %18 = arith.truncf %17 : vector<16x768xf32> to vector<16x768xbf16>
    %c0_7 = arith.constant 0 : index
    %c0_8 = arith.constant 0 : index
    %19 = vector.load %arg4[%c0_7, %c0_8] : memref<16x768xbf16, #tpu.memory_space<vmem>>, vector<16x768xbf16>
    tpu.vector_store %arg4[%c0_7, %c0_8], %18 {strides = array<i32>} : memref<16x768xbf16, #tpu.memory_space<vmem>>, vector<16x768xbf16>,
    return
  }
  func.func @transform_0(%arg0: i32) -> (i32, i32) {
    %c0_i32 = arith.constant 0 : i32
    %c0_i32_0 = arith.constant 0 : i32
    return %c0_i32, %arg0 : i32, i32
  }
  func.func @transform_1(%arg0: i32) -> (i32, i32) {
    %c0_i32 = arith.constant 0 : i32
    %c0_i32_0 = arith.constant 0 : i32
    %c0_i32_1 = arith.constant 0 : i32
    return %c0_i32, %c0_i32_0 : i32, i32
  }
  func.func @transform_2(%arg0: i32) -> (i32, i32) {
    %c0_i32 = arith.constant 0 : i32
    %c0_i32_0 = arith.constant 0 : i32
    %c0_i32_1 = arith.constant 0 : i32
    return %c0_i32, %c0_i32_0 : i32, i32
  }
  func.func @transform_3(%arg0: i32) -> (i32, i32) {
    %c0_i32 = arith.constant 0 : i32
    %c0_i32_0 = arith.constant 0 : i32
    return %c0_i32, %arg0 : i32, i32
  }
}

module attributes {stable_mosaic.version = 11 : i64} {
  func.func @_conv_pool_head_kernel(%arg0: i32, %arg1: memref<4x256x72xbf16, #tpu.memory_space<vmem>>, %arg2: memref<32x256xbf16, #tpu.memory_space<vmem>>, %arg3: memref<32x1xf32, #tpu.memory_space<vmem>>, %arg4: memref<10x32x72xf32, #tpu.memory_space<vmem>>, %arg5: memref<72x2xf32, #tpu.memory_space<vmem>>, %arg6: memref<10x1xf32, #tpu.memory_space<vmem>>, %arg7: memref<10x2xf32, #tpu.memory_space<vmem>>) attributes {dimension_semantics = [#tpu.dimension_semantics<arbitrary>], iteration_bounds = array<i64: 1>, scalar_prefetch = 0 : i64, scratch_operands = 0 : i64, tpu.core_type = #tpu.core_type<tc>, window_params = [{pipeline_mode = #tpu.pipeline_mode<synchronous>, transform_indices = @transform_0, window_bounds = array<i64: 4, 256, 72>}, {pipeline_mode = #tpu.pipeline_mode<synchronous>, transform_indices = @transform_1, window_bounds = array<i64: 32, 256>}, {pipeline_mode = #tpu.pipeline_mode<synchronous>, transform_indices = @transform_2, window_bounds = array<i64: 32, 1>}, {pipeline_mode = #tpu.pipeline_mode<synchronous>, transform_indices = @transform_3, window_bounds = array<i64: 10, 32, 72>}, {pipeline_mode = #tpu.pipeline_mode<synchronous>, transform_indices = @transform_4, window_bounds = array<i64: 72, 2>}, {pipeline_mode = #tpu.pipeline_mode<synchronous>, transform_indices = @transform_5, window_bounds = array<i64: 10, 1>}, {pipeline_mode = #tpu.pipeline_mode<synchronous>, transform_indices = @transform_6, window_bounds = array<i64: 10, 2>}]} {
    %c0 = arith.constant 0 : index
    %c0_0 = arith.constant 0 : index
    %0 = vector.load %arg2[%c0, %c0_0] : memref<32x256xbf16, #tpu.memory_space<vmem>>, vector<32x256xbf16>
    %c0_1 = arith.constant 0 : index
    %c0_2 = arith.constant 0 : index
    %c0_3 = arith.constant 0 : index
    %1 = vector.load %arg1[%c0_1, %c0_2, %c0_3] : memref<4x256x72xbf16, #tpu.memory_space<vmem>>, vector<1x256x72xbf16>
    %2 = vector.shape_cast %1 : vector<1x256x72xbf16> to vector<256x72xbf16>
    %cst = arith.constant dense<0.000000e+00> : vector<32x72xf32>
    %3 = tpu.matmul %0, %2, %cst {dimension_numbers = #tpu.dot_dimension_numbers<[1], [0], [0], [1], [0, 0, 1, 1], [], []>} : vector<32x256xbf16>, vector<256x72xbf16>, vector<32x72xf32> -> vector<32x72xf32>
    %c1 = arith.constant 1 : index
    %c0_4 = arith.constant 0 : index
    %c0_5 = arith.constant 0 : index
    %4 = vector.load %arg1[%c1, %c0_4, %c0_5] : memref<4x256x72xbf16, #tpu.memory_space<vmem>>, vector<1x256x72xbf16>
    %5 = vector.shape_cast %4 : vector<1x256x72xbf16> to vector<256x72xbf16>
    %cst_6 = arith.constant dense<0.000000e+00> : vector<32x72xf32>
    %6 = tpu.matmul %0, %5, %cst_6 {dimension_numbers = #tpu.dot_dimension_numbers<[1], [0], [0], [1], [0, 0, 1, 1], [], []>} : vector<32x256xbf16>, vector<256x72xbf16>, vector<32x72xf32> -> vector<32x72xf32>
    %7 = arith.maximumf %3, %6 : vector<32x72xf32>
    %c2 = arith.constant 2 : index
    %c0_7 = arith.constant 0 : index
    %c0_8 = arith.constant 0 : index
    %8 = vector.load %arg1[%c2, %c0_7, %c0_8] : memref<4x256x72xbf16, #tpu.memory_space<vmem>>, vector<1x256x72xbf16>
    %9 = vector.shape_cast %8 : vector<1x256x72xbf16> to vector<256x72xbf16>
    %cst_9 = arith.constant dense<0.000000e+00> : vector<32x72xf32>
    %10 = tpu.matmul %0, %9, %cst_9 {dimension_numbers = #tpu.dot_dimension_numbers<[1], [0], [0], [1], [0, 0, 1, 1], [], []>} : vector<32x256xbf16>, vector<256x72xbf16>, vector<32x72xf32> -> vector<32x72xf32>
    %11 = arith.maximumf %7, %10 : vector<32x72xf32>
    %c3 = arith.constant 3 : index
    %c0_10 = arith.constant 0 : index
    %c0_11 = arith.constant 0 : index
    %12 = vector.load %arg1[%c3, %c0_10, %c0_11] : memref<4x256x72xbf16, #tpu.memory_space<vmem>>, vector<1x256x72xbf16>
    %13 = vector.shape_cast %12 : vector<1x256x72xbf16> to vector<256x72xbf16>
    %cst_12 = arith.constant dense<0.000000e+00> : vector<32x72xf32>
    %14 = tpu.matmul %0, %13, %cst_12 {dimension_numbers = #tpu.dot_dimension_numbers<[1], [0], [0], [1], [0, 0, 1, 1], [], []>} : vector<32x256xbf16>, vector<256x72xbf16>, vector<32x72xf32> -> vector<32x72xf32>
    %15 = arith.maximumf %11, %14 : vector<32x72xf32>
    %c0_13 = arith.constant 0 : index
    %c0_14 = arith.constant 0 : index
    %16 = vector.load %arg3[%c0_13, %c0_14] : memref<32x1xf32, #tpu.memory_space<vmem>>, vector<32x1xf32>
    %17 = vector.broadcast %16 : vector<32x1xf32> to vector<32x72xf32>
    %18 = arith.addf %15, %17 : vector<32x72xf32>
    %cst_15 = arith.constant 0.000000e+00 : f32
    %19 = vector.broadcast %cst_15 : f32 to vector<32x72xf32>
    %20 = arith.cmpf oge, %18, %19 : vector<32x72xf32>
    %cst_16 = arith.constant 1.000000e-01 : f32
    %21 = vector.broadcast %cst_16 : f32 to vector<32x72xf32>
    %22 = arith.mulf %21, %18 : vector<32x72xf32>
    %23 = arith.select %20, %18, %22 : vector<32x72xi1>, vector<32x72xf32>
    %c0_17 = arith.constant 0 : index
    %c0_18 = arith.constant 0 : index
    %c0_19 = arith.constant 0 : index
    %24 = vector.load %arg4[%c0_17, %c0_18, %c0_19] : memref<10x32x72xf32, #tpu.memory_space<vmem>>, vector<10x32x72xf32>
    %25 = vector.shape_cast %23 : vector<32x72xf32> to vector<1x32x72xf32>
    %26 = vector.broadcast %25 : vector<1x32x72xf32> to vector<10x32x72xf32>
    %27 = arith.mulf %24, %26 : vector<10x32x72xf32>
    %cst_20 = arith.constant dense<0.000000e+00> : vector<10x72xf32>
    %28 = vector.multi_reduction <add>, %27, %cst_20 [1] : vector<10x32x72xf32> to vector<10x72xf32>
    %c0_21 = arith.constant 0 : index
    %c0_22 = arith.constant 0 : index
    %29 = vector.load %arg5[%c0_21, %c0_22] : memref<72x2xf32, #tpu.memory_space<vmem>>, vector<72x2xf32>
    %cst_23 = arith.constant dense<0.000000e+00> : vector<10x2xf32>
    %30 = tpu.matmul %28, %29, %cst_23 {dimension_numbers = #tpu.dot_dimension_numbers<[1], [0], [0], [1], [0, 0, 1, 1], [], []>} : vector<10x72xf32>, vector<72x2xf32>, vector<10x2xf32> -> vector<10x2xf32>
    %c0_24 = arith.constant 0 : index
    %c0_25 = arith.constant 0 : index
    %31 = vector.load %arg6[%c0_24, %c0_25] : memref<10x1xf32, #tpu.memory_space<vmem>>, vector<10x1xf32>
    %32 = vector.broadcast %31 : vector<10x1xf32> to vector<10x2xf32>
    %33 = arith.addf %30, %32 : vector<10x2xf32>
    %c0_26 = arith.constant 0 : index
    %c0_27 = arith.constant 0 : index
    %34 = vector.load %arg7[%c0_26, %c0_27] : memref<10x2xf32, #tpu.memory_space<vmem>>, vector<10x2xf32>
    tpu.vector_store %arg7[%c0_26, %c0_27], %33 {strides = array<i32>} : memref<10x2xf32, #tpu.memory_space<vmem>>, vector<10x2xf32>,
    return
  }
  func.func @transform_0(%arg0: i32) -> (i32, i32, i32) {
    %c0_i32 = arith.constant 0 : i32
    %c0_i32_0 = arith.constant 0 : i32
    %c0_i32_1 = arith.constant 0 : i32
    %c0_i32_2 = arith.constant 0 : i32
    return %c0_i32, %c0_i32_0, %c0_i32_1 : i32, i32, i32
  }
  func.func @transform_1(%arg0: i32) -> (i32, i32) {
    %c0_i32 = arith.constant 0 : i32
    %c0_i32_0 = arith.constant 0 : i32
    %c0_i32_1 = arith.constant 0 : i32
    return %c0_i32, %c0_i32_0 : i32, i32
  }
  func.func @transform_2(%arg0: i32) -> (i32, i32) {
    %c0_i32 = arith.constant 0 : i32
    %c0_i32_0 = arith.constant 0 : i32
    %c0_i32_1 = arith.constant 0 : i32
    return %c0_i32, %c0_i32_0 : i32, i32
  }
  func.func @transform_3(%arg0: i32) -> (i32, i32, i32) {
    %c0_i32 = arith.constant 0 : i32
    %c0_i32_0 = arith.constant 0 : i32
    %c0_i32_1 = arith.constant 0 : i32
    %c0_i32_2 = arith.constant 0 : i32
    return %c0_i32, %c0_i32_0, %c0_i32_1 : i32, i32, i32
  }
  func.func @transform_4(%arg0: i32) -> (i32, i32) {
    %c0_i32 = arith.constant 0 : i32
    %c0_i32_0 = arith.constant 0 : i32
    %c0_i32_1 = arith.constant 0 : i32
    return %c0_i32, %c0_i32_0 : i32, i32
  }
  func.func @transform_5(%arg0: i32) -> (i32, i32) {
    %c0_i32 = arith.constant 0 : i32
    %c0_i32_0 = arith.constant 0 : i32
    %c0_i32_1 = arith.constant 0 : i32
    return %c0_i32, %c0_i32_0 : i32, i32
  }
  func.func @transform_6(%arg0: i32) -> (i32, i32) {
    %c0_i32 = arith.constant 0 : i32
    %c0_i32_0 = arith.constant 0 : i32
    %c0_i32_1 = arith.constant 0 : i32
    return %c0_i32, %c0_i32_0 : i32, i32
  }
}

</mosaic_0001>

<bundles_post_ra>
// kernel: cnn_forward.2
= control target key start
LH: loop header
LB: loop body
LE: loop exit
PB: predicated region body
PF: predicated region fallthrough
CT: control target
= control target key end

     0   :  { %s1919_s12 = smov 0   ;;  %s1921_s13 = smov 0   ;;  %s2362_s0 = inlined_call_operand.vmem [shape: bf16[64,6144], index: 0, kind: input, shape index: {}]   ;;  %s2363_s1 = inlined_call_operand.vmem [shape: bf16[16,64], index: 1, kind: input, shape index: {}]   ;;  %s2364_s2 = inlined_call_operand.vmem [shape: f32[16,1], index: 2, kind: input, shape index: {}]   ;;  %s2365_s3 = inlined_call_operand.vmem [shape: bf16[16,1536], index: 3, kind: output, shape index: {}]  }
   0x1   :  { %s1923_s14 = smov 0  }
   0x2 LB: > { %s1712_s15 = sadd.s32 4294967295, %s1896_s14   ;;  %s1936_s16 = sadd.s32 1, %s1896_s14   ;;  %s1896_s14 = sphi %s1923_s14, %s2369_s14   ;;  %s1892_s13 = sphi %s1921_s13, %s2368_s13   ;;  %s1888_s12 = sphi %s1919_s12, %s2367_s12  }
   0x3   : > { %s17_s17 = ssub.s32 %s1896_s14, %s1936_s16  ;;  %s20_s18 = sadd.s32 1, %s1892_s13 }
   0x4   : > { %p18_p0 = scmp.eq.s32.totalorder %s17_s17, 0  ;;  %p27_p1 = scmp.ne.s32.totalorder %s1892_s13, %s1888_s12 }
   0x5   : > { %p28_p2 = scmp.eq.s32.totalorder %s1896_s14, 0  ;;  %p99_p3 = scmp.eq.s32.totalorder %s1712_s15, 1 }
   0x6   : > { %s1947_s19 = scalar_select %p18_p0, %s1892_s13, %s20_s18  }
   0x7   : > { %p29_p4 = por %p28_p2, %p27_p1  ;;  %p1949_p5 = por %p99_p3, %p27_p1 }
   0x8   : > { %p1715_p6 = scmp.ge.s32.totalorder %s1896_s14, 2 }
   0xa   : > { %127 = sbr.rel (%p1715_p6) target bundleno = 70 (0x46), region = 24 }
  0x11   : > { %130 = sbr.rel (!%p29_p4) target bundleno = 70 (0x46), region = 28  ;;  %s132_s21 = sand.u32 (%p29_p4), 1, %s1892_s13  }
  0x12   : > { %s1836_s22 = smul.u32 (%p29_p4), 96, %s1896_s14 }
  0x13   : > { %s1844_s23 = smul.u32 (%p29_p4), 768, %s132_s21 }
  0x14   : > { %s1959_s26 = scalar_lea.vmem (%p29_p4), %s2362_s0, %s1836_s22 }
  0x15   : > { %v150_v0 = vld [vmem:[%s1959_s26] sm:$0xff] (%p29_p4)  ;;  %v152_v1 = vld [vmem:[%s1959_s26 + $0x8] sm:$0xff] (%p29_p4)  ;;  %v154_v2 = vld [vmem:[%s1959_s26 + $0x10] sm:$0xff] (%p29_p4)  ;;  %s1964_s27 = scalar_lea.vmem (%p29_p4), [#allocation2], %s1844_s23 }
  0x16   : > { %151 = vst [vmem:[%s1964_s27] sm:$0xff] (%p29_p4), %v150_v0  ;;  %153 = vst [vmem:[%s1964_s27 + $0x8] sm:$0xff] (%p29_p4), %v152_v1  ;;  %v156_v3 = vld [vmem:[%s1959_s26 + $0x18] sm:$0xff] (%p29_p4)  ;;  %v158_v4 = vld [vmem:[%s1959_s26 + $0x20] sm:$0xff] (%p29_p4) }
  0x17   : > { %155 = vst [vmem:[%s1964_s27 + $0x10] sm:$0xff] (%p29_p4), %v154_v2  ;;  %v160_v5 = vld [vmem:[%s1959_s26 + $0x28] sm:$0xff] (%p29_p4)  ;;  %157 = vst [vmem:[%s1964_s27 + $0x18] sm:$0xff] (%p29_p4), %v156_v3  ;;  %v162_v6 = vld [vmem:[%s1959_s26 + $0x30] sm:$0xff] (%p29_p4) }
  0x18   : > { %159 = vst [vmem:[%s1964_s27 + $0x20] sm:$0xff] %v158_v4  ;;  %161 = vst [vmem:[%s1964_s27 + $0x28] sm:$0xff] %v160_v5  ;;  %v164_v7 = vld [vmem:[%s1959_s26 + $0x38] sm:$0xff]  ;;  %v166_v8 = vld [vmem:[%s1959_s26 + $0x40] sm:$0xff] }
  0x19   : > { %163 = vst [vmem:[%s1964_s27 + $0x30] sm:$0xff] %v162_v6  ;;  %165 = vst [vmem:[%s1964_s27 + $0x38] sm:$0xff] %v164_v7  ;;  %v168_v9 = vld [vmem:[%s1959_s26 + $0x48] sm:$0xff]  ;;  %v170_v10 = vld [vmem:[%s1959_s26 + $0x50] sm:$0xff] }
  0x1a   : > { %167 = vst [vmem:[%s1964_s27 + $0x40] sm:$0xff] %v166_v8  ;;  %v172_v11 = vld [vmem:[%s1959_s26 + $0x58] sm:$0xff]  ;;  %169 = vst [vmem:[%s1964_s27 + $0x48] sm:$0xff] %v168_v9  ;;  %v174_v12 = vld [vmem:[%s1959_s26 + $0xc0] sm:$0xff] }
  0x1b   : > { %171 = vst [vmem:[%s1964_s27 + $0x50] sm:$0xff] %v170_v10  ;;  %173 = vst [vmem:[%s1964_s27 + $0x58] sm:$0xff] %v172_v11  ;;  %v176_v13 = vld [vmem:[%s1959_s26 + $0xc8] sm:$0xff]  ;;  %v178_v14 = vld [vmem:[%s1959_s26 + $0xd0] sm:$0xff] }
  0x1c   : > { %175 = vst [vmem:[%s1964_s27 + $0x60] sm:$0xff] %v174_v12  ;;  %177 = vst [vmem:[%s1964_s27 + $0x68] sm:$0xff] %v176_v13  ;;  %v180_v15 = vld [vmem:[%s1959_s26 + $0xd8] sm:$0xff]  ;;  %v182_v16 = vld [vmem:[%s1959_s26 + $0xe0] sm:$0xff] }
  0x1d   : > { %179 = vst [vmem:[%s1964_s27 + $0x70] sm:$0xff] %v178_v14  ;;  %v184_v17 = vld [vmem:[%s1959_s26 + $0xe8] sm:$0xff]  ;;  %181 = vst [vmem:[%s1964_s27 + $0x78] sm:$0xff] %v180_v15  ;;  %v186_v18 = vld [vmem:[%s1959_s26 + $0xf0] sm:$0xff] }
  0x1e   : > { %183 = vst [vmem:[%s1964_s27 + $0x80] sm:$0xff] %v182_v16  ;;  %185 = vst [vmem:[%s1964_s27 + $0x88] sm:$0xff] %v184_v17  ;;  %v188_v19 = vld [vmem:[%s1959_s26 + $0xf8] sm:$0xff]  ;;  %v190_v20 = vld [vmem:[%s1959_s26 + $0x100] sm:$0xff] }
  0x1f   : > { %187 = vst [vmem:[%s1964_s27 + $0x90] sm:$0xff] %v186_v18  ;;  %189 = vst [vmem:[%s1964_s27 + $0x98] sm:$0xff] %v188_v19  ;;  %v192_v21 = vld [vmem:[%s1959_s26 + $0x108] sm:$0xff]  ;;  %v194_v22 = vld [vmem:[%s1959_s26 + $0x110] sm:$0xff] }
  0x20   : > { %191 = vst [vmem:[%s1964_s27 + $0xa0] sm:$0xff] %v190_v20  ;;  %v196_v23 = vld [vmem:[%s1959_s26 + $0x118] sm:$0xff]  ;;  %193 = vst [vmem:[%s1964_s27 + $0xa8] sm:$0xff] %v192_v21  ;;  %v198_v24 = vld [vmem:[%s1959_s26 + $0x180] sm:$0xff] }
  0x21   : > { %195 = vst [vmem:[%s1964_s27 + $0xb0] sm:$0xff] %v194_v22  ;;  %197 = vst [vmem:[%s1964_s27 + $0xb8] sm:$0xff] %v196_v23  ;;  %v200_v25 = vld [vmem:[%s1959_s26 + $0x188] sm:$0xff]  ;;  %v202_v26 = vld [vmem:[%s1959_s26 + $0x190] sm:$0xff] }
  0x22   : > { %199 = vst [vmem:[%s1964_s27 + $0xc0] sm:$0xff] %v198_v24  ;;  %201 = vst [vmem:[%s1964_s27 + $0xc8] sm:$0xff] %v200_v25  ;;  %v204_v27 = vld [vmem:[%s1959_s26 + $0x198] sm:$0xff]  ;;  %v206_v28 = vld [vmem:[%s1959_s26 + $0x1a0] sm:$0xff] }
  0x23   : > { %203 = vst [vmem:[%s1964_s27 + $0xd0] sm:$0xff] %v202_v26  ;;  %v208_v29 = vld [vmem:[%s1959_s26 + $0x1a8] sm:$0xff]  ;;  %205 = vst [vmem:[%s1964_s27 + $0xd8] sm:$0xff] %v204_v27  ;;  %v210_v30 = vld [vmem:[%s1959_s26 + $0x1b0] sm:$0xff] }
  0x24   : > { %207 = vst [vmem:[%s1964_s27 + $0xe0] sm:$0xff] %v206_v28  ;;  %209 = vst [vmem:[%s1964_s27 + $0xe8] sm:$0xff] %v208_v29  ;;  %v212_v31 = vld [vmem:[%s1959_s26 + $0x1b8] sm:$0xff]  ;;  %v214_v32 = vld [vmem:[%s1959_s26 + $0x1c0] sm:$0xff] }
  0x25   : > { %211 = vst [vmem:[%s1964_s27 + $0xf0] sm:$0xff] %v210_v30  ;;  %213 = vst [vmem:[%s1964_s27 + $0xf8] sm:$0xff] %v212_v31  ;;  %v216_v33 = vld [vmem:[%s1959_s26 + $0x1c8] sm:$0xff]  ;;  %v218_v34 = vld [vmem:[%s1959_s26 + $0x1d0] sm:$0xff] }
  0x26   : > { %215 = vst [vmem:[%s1964_s27 + $0x100] sm:$0xff] %v214_v32  ;;  %v220_v35 = vld [vmem:[%s1959_s26 + $0x1d8] sm:$0xff]  ;;  %217 = vst [vmem:[%s1964_s27 + $0x108] sm:$0xff] %v216_v33  ;;  %v222_v36 = vld [vmem:[%s1959_s26 + $0x240] sm:$0xff] }
  0x27   : > { %219 = vst [vmem:[%s1964_s27 + $0x110] sm:$0xff] %v218_v34  ;;  %221 = vst [vmem:[%s1964_s27 + $0x118] sm:$0xff] %v220_v35  ;;  %v224_v37 = vld [vmem:[%s1959_s26 + $0x248] sm:$0xff]  ;;  %v226_v38 = vld [vmem:[%s1959_s26 + $0x250] sm:$0xff] }
  0x28   : > { %223 = vst [vmem:[%s1964_s27 + $0x120] sm:$0xff] %v222_v36  ;;  %225 = vst [vmem:[%s1964_s27 + $0x128] sm:$0xff] %v224_v37  ;;  %v228_v39 = vld [vmem:[%s1959_s26 + $0x258] sm:$0xff]  ;;  %v230_v40 = vld [vmem:[%s1959_s26 + $0x260] sm:$0xff] }
  0x29   : > { %227 = vst [vmem:[%s1964_s27 + $0x130] sm:$0xff] %v226_v38  ;;  %v232_v41 = vld [vmem:[%s1959_s26 + $0x268] sm:$0xff]  ;;  %229 = vst [vmem:[%s1964_s27 + $0x138] sm:$0xff] %v228_v39  ;;  %v234_v42 = vld [vmem:[%s1959_s26 + $0x270] sm:$0xff] }
  0x2a   : > { %231 = vst [vmem:[%s1964_s27 + $0x140] sm:$0xff] %v230_v40  ;;  %233 = vst [vmem:[%s1964_s27 + $0x148] sm:$0xff] %v232_v41  ;;  %v236_v43 = vld [vmem:[%s1959_s26 + $0x278] sm:$0xff]  ;;  %v238_v44 = vld [vmem:[%s1959_s26 + $0x280] sm:$0xff] }
  0x2b   : > { %235 = vst [vmem:[%s1964_s27 + $0x150] sm:$0xff] %v234_v42  ;;  %237 = vst [vmem:[%s1964_s27 + $0x158] sm:$0xff] %v236_v43  ;;  %v240_v45 = vld [vmem:[%s1959_s26 + $0x288] sm:$0xff]  ;;  %v242_v46 = vld [vmem:[%s1959_s26 + $0x290] sm:$0xff] }
  0x2c   : > { %239 = vst [vmem:[%s1964_s27 + $0x160] sm:$0xff] %v238_v44  ;;  %v244_v47 = vld [vmem:[%s1959_s26 + $0x298] sm:$0xff]  ;;  %241 = vst [vmem:[%s1964_s27 + $0x168] sm:$0xff] %v240_v45  ;;  %v246_v48 = vld [vmem:[%s1959_s26 + $0x300] sm:$0xff] }
  0x2d   : > { %243 = vst [vmem:[%s1964_s27 + $0x170] sm:$0xff] %v242_v46  ;;  %245 = vst [vmem:[%s1964_s27 + $0x178] sm:$0xff] %v244_v47  ;;  %v248_v49 = vld [vmem:[%s1959_s26 + $0x308] sm:$0xff]  ;;  %v250_v50 = vld [vmem:[%s1959_s26 + $0x310] sm:$0xff] }
  0x2e   : > { %247 = vst [vmem:[%s1964_s27 + $0x180] sm:$0xff] %v246_v48  ;;  %249 = vst [vmem:[%s1964_s27 + $0x188] sm:$0xff] %v248_v49  ;;  %v252_v51 = vld [vmem:[%s1959_s26 + $0x318] sm:$0xff]  ;;  %v254_v52 = vld [vmem:[%s1959_s26 + $0x320] sm:$0xff] }
  0x2f   : > { %251 = vst [vmem:[%s1964_s27 + $0x190] sm:$0xff] %v250_v50  ;;  %v256_v53 = vld [vmem:[%s1959_s26 + $0x328] sm:$0xff]  ;;  %253 = vst [vmem:[%s1964_s27 + $0x198] sm:$0xff] %v252_v51  ;;  %v258_v54 = vld [vmem:[%s1959_s26 + $0x330] sm:$0xff] }
  0x30   : > { %255 = vst [vmem:[%s1964_s27 + $0x1a0] sm:$0xff] %v254_v52  ;;  %257 = vst [vmem:[%s1964_s27 + $0x1a8] sm:$0xff] %v256_v53  ;;  %v260_v55 = vld [vmem:[%s1959_s26 + $0x338] sm:$0xff]  ;;  %v262_v56 = vld [vmem:[%s1959_s26 + $0x340] sm:$0xff] }
  0x31   : > { %259 = vst [vmem:[%s1964_s27 + $0x1b0] sm:$0xff] %v258_v54  ;;  %261 = vst [vmem:[%s1964_s27 + $0x1b8] sm:$0xff] %v260_v55  ;;  %v264_v57 = vld [vmem:[%s1959_s26 + $0x348] sm:$0xff]  ;;  %v266_v58 = vld [vmem:[%s1959_s26 + $0x350] sm:$0xff] }
  0x32   : > { %263 = vst [vmem:[%s1964_s27 + $0x1c0] sm:$0xff] %v262_v56  ;;  %v268_v59 = vld [vmem:[%s1959_s26 + $0x358] sm:$0xff]  ;;  %265 = vst [vmem:[%s1964_s27 + $0x1c8] sm:$0xff] %v264_v57  ;;  %v270_v60 = vld [vmem:[%s1959_s26 + $0x3c0] sm:$0xff] }
  0x33   : > { %267 = vst [vmem:[%s1964_s27 + $0x1d0] sm:$0xff] %v266_v58  ;;  %269 = vst [vmem:[%s1964_s27 + $0x1d8] sm:$0xff] %v268_v59  ;;  %v272_v61 = vld [vmem:[%s1959_s26 + $0x3c8] sm:$0xff]  ;;  %v274_v62 = vld [vmem:[%s1959_s26 + $0x3d0] sm:$0xff] }
  0x34   : > { %271 = vst [vmem:[%s1964_s27 + $0x1e0] sm:$0xff] %v270_v60  ;;  %273 = vst [vmem:[%s1964_s27 + $0x1e8] sm:$0xff] %v272_v61  ;;  %v276_v63 = vld [vmem:[%s1959_s26 + $0x3d8] sm:$0xff]  ;;  %v278_v0 = vld [vmem:[%s1959_s26 + $0x3e0] sm:$0xff] }
  0x35   : > { %275 = vst [vmem:[%s1964_s27 + $0x1f0] sm:$0xff] %v274_v62  ;;  %v280_v1 = vld [vmem:[%s1959_s26 + $0x3e8] sm:$0xff]  ;;  %277 = vst [vmem:[%s1964_s27 + $0x1f8] sm:$0xff] %v276_v63  ;;  %v282_v2 = vld [vmem:[%s1959_s26 + $0x3f0] sm:$0xff] }
  0x36   : > { %279 = vst [vmem:[%s1964_s27 + $0x200] sm:$0xff] %v278_v0  ;;  %281 = vst [vmem:[%s1964_s27 + $0x208] sm:$0xff] %v280_v1  ;;  %v284_v3 = vld [vmem:[%s1959_s26 + $0x3f8] sm:$0xff]  ;;  %v286_v4 = vld [vmem:[%s1959_s26 + $0x400] sm:$0xff] }
  0x37   : > { %283 = vst [vmem:[%s1964_s27 + $0x210] sm:$0xff] %v282_v2  ;;  %285 = vst [vmem:[%s1964_s27 + $0x218] sm:$0xff] %v284_v3  ;;  %v288_v5 = vld [vmem:[%s1959_s26 + $0x408] sm:$0xff]  ;;  %v290_v6 = vld [vmem:[%s1959_s26 + $0x410] sm:$0xff] }
  0x38   : > { %287 = vst [vmem:[%s1964_s27 + $0x220] sm:$0xff] %v286_v4  ;;  %v292_v7 = vld [vmem:[%s1959_s26 + $0x418] sm:$0xff]  ;;  %289 = vst [vmem:[%s1964_s27 + $0x228] sm:$0xff] %v288_v5  ;;  %v294_v8 = vld [vmem:[%s1959_s26 + $0x480] sm:$0xff] }
  0x39   : > { %291 = vst [vmem:[%s1964_s27 + $0x230] sm:$0xff] %v290_v6  ;;  %293 = vst [vmem:[%s1964_s27 + $0x238] sm:$0xff] %v292_v7  ;;  %v296_v9 = vld [vmem:[%s1959_s26 + $0x488] sm:$0xff]  ;;  %v298_v10 = vld [vmem:[%s1959_s26 + $0x490] sm:$0xff] }
  0x3a   : > { %295 = vst [vmem:[%s1964_s27 + $0x240] sm:$0xff] %v294_v8  ;;  %297 = vst [vmem:[%s1964_s27 + $0x248] sm:$0xff] %v296_v9  ;;  %v300_v11 = vld [vmem:[%s1959_s26 + $0x498] sm:$0xff]  ;;  %v302_v12 = vld [vmem:[%s1959_s26 + $0x4a0] sm:$0xff] }
  0x3b   : > { %299 = vst [vmem:[%s1964_s27 + $0x250] sm:$0xff] %v298_v10  ;;  %v304_v13 = vld [vmem:[%s1959_s26 + $0x4a8] sm:$0xff]  ;;  %301 = vst [vmem:[%s1964_s27 + $0x258] sm:$0xff] %v300_v11  ;;  %v306_v14 = vld [vmem:[%s1959_s26 + $0x4b0] sm:$0xff] }
  0x3c   : > { %303 = vst [vmem:[%s1964_s27 + $0x260] sm:$0xff] %v302_v12  ;;  %305 = vst [vmem:[%s1964_s27 + $0x268] sm:$0xff] %v304_v13  ;;  %v308_v15 = vld [vmem:[%s1959_s26 + $0x4b8] sm:$0xff]  ;;  %v310_v16 = vld [vmem:[%s1959_s26 + $0x4c0] sm:$0xff] }
  0x3d   : > { %307 = vst [vmem:[%s1964_s27 + $0x270] sm:$0xff] %v306_v14  ;;  %309 = vst [vmem:[%s1964_s27 + $0x278] sm:$0xff] %v308_v15  ;;  %v312_v17 = vld [vmem:[%s1959_s26 + $0x4c8] sm:$0xff]  ;;  %v314_v18 = vld [vmem:[%s1959_s26 + $0x4d0] sm:$0xff] }
  0x3e   : > { %311 = vst [vmem:[%s1964_s27 + $0x280] sm:$0xff] %v310_v16  ;;  %v316_v19 = vld [vmem:[%s1959_s26 + $0x4d8] sm:$0xff]  ;;  %313 = vst [vmem:[%s1964_s27 + $0x288] sm:$0xff] %v312_v17  ;;  %v318_v20 = vld [vmem:[%s1959_s26 + $0x540] sm:$0xff] }
  0x3f   : > { %315 = vst [vmem:[%s1964_s27 + $0x290] sm:$0xff] %v314_v18  ;;  %317 = vst [vmem:[%s1964_s27 + $0x298] sm:$0xff] %v316_v19  ;;  %v320_v21 = vld [vmem:[%s1959_s26 + $0x548] sm:$0xff]  ;;  %v322_v22 = vld [vmem:[%s1959_s26 + $0x550] sm:$0xff] }
  0x40   : > { %319 = vst [vmem:[%s1964_s27 + $0x2a0] sm:$0xff] %v318_v20  ;;  %321 = vst [vmem:[%s1964_s27 + $0x2a8] sm:$0xff] %v320_v21  ;;  %v324_v23 = vld [vmem:[%s1959_s26 + $0x558] sm:$0xff]  ;;  %v326_v24 = vld [vmem:[%s1959_s26 + $0x560] sm:$0xff] }
  0x41   : > { %323 = vst [vmem:[%s1964_s27 + $0x2b0] sm:$0xff] %v322_v22  ;;  %v328_v25 = vld [vmem:[%s1959_s26 + $0x568] sm:$0xff]  ;;  %325 = vst [vmem:[%s1964_s27 + $0x2b8] sm:$0xff] %v324_v23  ;;  %v330_v26 = vld [vmem:[%s1959_s26 + $0x570] sm:$0xff] }
  0x42   : > { %327 = vst [vmem:[%s1964_s27 + $0x2c0] sm:$0xff] %v326_v24  ;;  %329 = vst [vmem:[%s1964_s27 + $0x2c8] sm:$0xff] %v328_v25  ;;  %v332_v27 = vld [vmem:[%s1959_s26 + $0x578] sm:$0xff]  ;;  %v334_v28 = vld [vmem:[%s1959_s26 + $0x580] sm:$0xff] }
  0x43   : > { %331 = vst [vmem:[%s1964_s27 + $0x2d0] sm:$0xff] %v330_v26  ;;  %333 = vst [vmem:[%s1964_s27 + $0x2d8] sm:$0xff] %v332_v27  ;;  %v336_v29 = vld [vmem:[%s1959_s26 + $0x588] sm:$0xff]  ;;  %v338_v30 = vld [vmem:[%s1959_s26 + $0x590] sm:$0xff] }
  0x44   : > { %335 = vst [vmem:[%s1964_s27 + $0x2e0] sm:$0xff] %v334_v28  ;;  %v340_v31 = vld [vmem:[%s1959_s26 + $0x598] sm:$0xff]  ;;  %337 = vst [vmem:[%s1964_s27 + $0x2e8] sm:$0xff] %v336_v29 }
  0x45   : > { %339 = vst [vmem:[%s1964_s27 + $0x2f0] sm:$0xff] %v338_v30  ;;  %341 = vst [vmem:[%s1964_s27 + $0x2f8] sm:$0xff] %v340_v31 }
  0x46 PF: > { %p1717_p7 = scmp.ge.s32.totalorder %s1896_s14, 1  ;;  %p346_p8 = scmp.lt.s32.totalorder %s1896_s14, 3 }
  0x48   : > { %p347_p9 = pnand %p1717_p7, %p346_p8 }
  0x49   : > { %s353_s28 = sand.u32 (!%p347_p9), 1, %s1888_s12   ;;  %v1898_v32 = vmov (!%p347_p9), 0   ;;  %v1517_v33 = vld [vmem:[%s2364_s2] sm:$0xff] (!%p347_p9)  ;;  %v1518_v34 = vld [vmem:[%s2364_s2 + $0x8] sm:$0xff] (!%p347_p9)  ;;  %vm961_vm0 = vcmask (!%p347_p9), 523264  }
  0x4a   : > { %350 = sbr.rel (%p347_p9) target bundleno = 414 (0x19e), region = 51  ;;  %997 = vmatprep.mubr.bf16.mxu0 (!%p347_p9), %v1898_v32  ;;  %1040 = vmatprep.mubr.bf16.mxu1 (!%p347_p9), %v1898_v32  ;;  %v2196_v11 = vld [vmem:[%s2363_s1] sm:$0xff] (!%p347_p9)  }
  0x4b   : > { %s1845_s29 = smul.u32 (!%p347_p9), 768, %s353_s28  ;;  %1872 = vset.pattern.permute.xlu0 (!%p347_p9), %v1898_v32 }
  0x4c   : > { %1521 = vperm.xlu0 (!%p347_p9), %1872, %v1517_v33   ;;  %s1846_s10 = smul.u32 (!%p347_p9), 48, %s353_s28 }
  0x4d   : > { %s2169_s7 = scalar_lea.vmem (!%p347_p9), [#allocation2], %s1845_s29 }
  0x4e   : > { %v380_v35 = vld [vmem:[%s2169_s7] sm:$0xff] (!%p347_p9)  ;;  %v381_v37 = vld [vmem:[%s2169_s7 + $0x8] sm:$0xff] (!%p347_p9)  ;;  %v382_v1 = vld [vmem:[%s2169_s7 + $0x10] sm:$0xff] (!%p347_p9)  ;;  %s2322_s11 = scalar_lea.vmem (!%p347_p9), [#allocation3], %s1846_s10 }
  0x4f   : > { %v392_v36 = vld [vmem:[%s2169_s7 + $0x60] sm:$0xff] (!%p347_p9)  ;;  %v393_v39 = vld [vmem:[%s2169_s7 + $0x68] sm:$0xff] (!%p347_p9)  ;;  %v394_v2 = vld [vmem:[%s2169_s7 + $0x70] sm:$0xff] (!%p347_p9) }
  0x50   : > { %v1720_v38 = vcombine.high (!%p347_p9), %v380_v35, %v392_v36  ;;  %v1719_v40 = vcombine.low (!%p347_p9), %v380_v35, %v392_v36  ;;  %v404_v41 = vld [vmem:[%s2169_s7 + $0xc0] sm:$0xff] (!%p347_p9)  ;;  %v1722_v43 = vcombine.high (!%p347_p9), %v381_v37, %v393_v39  ;;  %v1721_v44 = vcombine.low (!%p347_p9), %v381_v37, %v393_v39  ;;  %v405_v46 = vld [vmem:[%s2169_s7 + $0xc8] sm:$0xff] (!%p347_p9)  ;;  %1526 = vperm.xlu0 (!%p347_p9), %1872, %v1518_v34   ;;  %v383_v3 = vld [vmem:[%s2169_s7 + $0x18] sm:$0xff] (!%p347_p9) }
  0x51   : > { %v416_v42 = vld [vmem:[%s2169_s7 + $0x120] sm:$0xff]  ;;  %v417_v47 = vld [vmem:[%s2169_s7 + $0x128] sm:$0xff]  ;;  %v395_v4 = vld [vmem:[%s2169_s7 + $0x78] sm:$0xff]  ;;  %v1724_v7 = vcombine.high %v382_v1, %v394_v2  ;;  %v1723_v14 = vcombine.low %v382_v1, %v394_v2  ;;  %s1843_s12 = smul.u32 (%p1949_p5), 24, %s1712_s15 }
  0x52   : > { %v1744_v45 = vcombine.high %v404_v41, %v416_v42  ;;  %v428_v48 = vld [vmem:[%s2169_s7 + $0x180] sm:$0xff]  ;;  %965 = vmatprep.subr.bf16.mxu0 %v1720_v38  ;;  %v1746_v49 = vcombine.high %v405_v46, %v417_v47  ;;  %v429_v51 = vld [vmem:[%s2169_s7 + $0x188] sm:$0xff]  ;;  %1008 = vmatprep.subr.bf16.mxu1 %v1722_v43  ;;  %v1743_v53 = vcombine.low %v404_v41, %v416_v42  ;;  %v406_v9 = vld [vmem:[%s2169_s7 + $0xd0] sm:$0xff] }
  0x53   : > { %v440_v50 = vld [vmem:[%s2169_s7 + $0x1e0] sm:$0xff]  ;;  %v441_v52 = vld [vmem:[%s2169_s7 + $0x1e8] sm:$0xff]  ;;  %966 = vmatpush1.bf16.msra.mxu0 %v1719_v40  ;;  %1009 = vmatpush1.bf16.msra.mxu1 %v1721_v44  ;;  %v1745_v54 = vcombine.low %v405_v46, %v417_v47  ;;  %v1726_v8 = vcombine.high %v383_v3, %v395_v4  ;;  %v418_v10 = vld [vmem:[%s2169_s7 + $0x130] sm:$0xff]  ;;  %v1725_v15 = vcombine.low %v383_v3, %v395_v4  ;;  %s1628_s20 = scalar_lea.vmem (%p1949_p5), %s2365_s3, %s1843_s12 }
  0x54   : > { %967 = vmatprep.subr.bf16.mxu0 %v1744_v45  ;;  %v1768_v55 = vcombine.high %v428_v48, %v440_v50  ;;  %1010 = vmatprep.subr.bf16.mxu1 %v1746_v49  ;;  %v1770_v56 = vcombine.high %v429_v51, %v441_v52  ;;  %v452_v57 = vld [vmem:[%s2169_s7 + $0x240] sm:$0xff]  ;;  %v453_v59 = vld [vmem:[%s2169_s7 + $0x248] sm:$0xff]  ;;  %v1767_v61 = vcombine.low %v428_v48, %v440_v50  ;;  %v407_v12 = vld [vmem:[%s2169_s7 + $0xd8] sm:$0xff] }
  0x55   : > { %v464_v58 = vld [vmem:[%s2169_s7 + $0x2a0] sm:$0xff]  ;;  %v465_v60 = vld [vmem:[%s2169_s7 + $0x2a8] sm:$0xff]  ;;  %v1769_v62 = vcombine.low %v429_v51, %v441_v52  ;;  %v419_v13 = vld [vmem:[%s2169_s7 + $0x138] sm:$0xff]  ;;  %v1748_v16 = vcombine.high %v406_v9, %v418_v10  ;;  %v1747_v22 = vcombine.low %v406_v9, %v418_v10 }
  0x56   : > { %v1792_v63 = vcombine.high %v452_v57, %v464_v58  ;;  %v1794_v0 = vcombine.high %v453_v59, %v465_v60  ;;  %v1791_v5 = vcombine.low %v452_v57, %v464_v58  ;;  %v1793_v6 = vcombine.low %v453_v59, %v465_v60  ;;  %v430_v18 = vld [vmem:[%s2169_s7 + $0x190] sm:$0xff]  ;;  %v431_v20 = vld [vmem:[%s2169_s7 + $0x198] sm:$0xff]  ;;  %v384_v35 = vld [vmem:[%s2169_s7 + $0x20] sm:$0xff] }
  0x57   : > { %968 = vmatpush1.bf16.msra.mxu0 %v1743_v53  ;;  %1011 = vmatpush1.bf16.msra.mxu1 %v1745_v54  ;;  %v1750_v17 = vcombine.high %v407_v12, %v419_v13  ;;  %v442_v19 = vld [vmem:[%s2169_s7 + $0x1f0] sm:$0xff]  ;;  %v443_v21 = vld [vmem:[%s2169_s7 + $0x1f8] sm:$0xff]  ;;  %v1749_v23 = vcombine.low %v407_v12, %v419_v13  ;;  %v396_v36 = vld [vmem:[%s2169_s7 + $0x80] sm:$0xff] }
  0x58   : > { %969 = vmatprep.subr.bf16.mxu0 %v1768_v55  ;;  %1012 = vmatprep.subr.bf16.mxu1 %v1770_v56  ;;  %v1772_v24 = vcombine.high %v430_v18, %v442_v19  ;;  %v1774_v25 = vcombine.high %v431_v20, %v443_v21  ;;  %v454_v26 = vld [vmem:[%s2169_s7 + $0x250] sm:$0xff]  ;;  %v455_v28 = vld [vmem:[%s2169_s7 + $0x258] sm:$0xff]  ;;  %v1771_v30 = vcombine.low %v430_v18, %v442_v19  ;;  %v385_v37 = vld [vmem:[%s2169_s7 + $0x28] sm:$0xff] }
  0x59   : > { %v466_v27 = vld [vmem:[%s2169_s7 + $0x2b0] sm:$0xff]  ;;  %v467_v29 = vld [vmem:[%s2169_s7 + $0x2b8] sm:$0xff]  ;;  %v1773_v31 = vcombine.low %v431_v20, %v443_v21  ;;  %v397_v38 = vld [vmem:[%s2169_s7 + $0x88] sm:$0xff]  ;;  %v1728_v41 = vcombine.high %v384_v35, %v396_v36  ;;  %v1727_v47 = vcombine.low %v384_v35, %v396_v36 }
  0x5a   : > { %v1796_v33 = vcombine.high %v454_v26, %v466_v27  ;;  %v1798_v34 = vcombine.high %v455_v28, %v467_v29  ;;  %v1795_v39 = vcombine.low %v454_v26, %v466_v27  ;;  %v1797_v40 = vcombine.low %v455_v28, %v467_v29  ;;  %v408_v43 = vld [vmem:[%s2169_s7 + $0xe0] sm:$0xff]  ;;  %v409_v45 = vld [vmem:[%s2169_s7 + $0xe8] sm:$0xff]  ;;  %v386_v3 = vld [vmem:[%s2169_s7 + $0x30] sm:$0xff] }
  0x5b   : > { %970 = vmatpush1.bf16.msra.mxu0 %v1767_v61  ;;  %1013 = vmatpush1.bf16.msra.mxu1 %v1769_v62  ;;  %v1730_v42 = vcombine.high %v385_v37, %v397_v38  ;;  %v420_v44 = vld [vmem:[%s2169_s7 + $0x140] sm:$0xff]  ;;  %v421_v46 = vld [vmem:[%s2169_s7 + $0x148] sm:$0xff]  ;;  %v1729_v48 = vcombine.low %v385_v37, %v397_v38  ;;  %v398_v4 = vld [vmem:[%s2169_s7 + $0x90] sm:$0xff] }
  0x5c   : > { %971 = vmatprep.subr.bf16.mxu0 %v1792_v63  ;;  %1014 = vmatprep.subr.bf16.mxu1 %v1794_v0  ;;  %v1752_v49 = vcombine.high %v408_v43, %v420_v44  ;;  %v1754_v50 = vcombine.high %v409_v45, %v421_v46  ;;  %v432_v51 = vld [vmem:[%s2169_s7 + $0x1a0] sm:$0xff]  ;;  %v433_v53 = vld [vmem:[%s2169_s7 + $0x1a8] sm:$0xff]  ;;  %v1751_v55 = vcombine.low %v408_v43, %v420_v44  ;;  %v410_v12 = vld [vmem:[%s2169_s7 + $0xf0] sm:$0xff] }
  0x5d   : > { %v444_v52 = vld [vmem:[%s2169_s7 + $0x200] sm:$0xff]  ;;  %v445_v54 = vld [vmem:[%s2169_s7 + $0x208] sm:$0xff]  ;;  %v1753_v56 = vcombine.low %v409_v45, %v421_v46  ;;  %v1732_v9 = vcombine.high %v386_v3, %v398_v4  ;;  %v422_v13 = vld [vmem:[%s2169_s7 + $0x150] sm:$0xff] }
  0x5e   : > { %v1776_v57 = vcombine.high %v432_v51, %v444_v52  ;;  %v1778_v58 = vcombine.high %v433_v53, %v445_v54  ;;  %v456_v59 = vld [vmem:[%s2169_s7 + $0x260] sm:$0xff]  ;;  %v457_v61 = vld [vmem:[%s2169_s7 + $0x268] sm:$0xff]  ;;  %v1775_v63 = vcombine.low %v432_v51, %v444_v52  ;;  %v1777_v0 = vcombine.low %v433_v53, %v445_v54  ;;  %v434_v20 = vld [vmem:[%s2169_s7 + $0x1b0] sm:$0xff] }
  0x5f   : > { %972 = vmatpush1.bf16.msra.mxu0 %v1791_v5  ;;  %1015 = vmatpush1.bf16.msra.mxu1 %v1793_v6  ;;  %v468_v60 = vld [vmem:[%s2169_s7 + $0x2c0] sm:$0xff]  ;;  %v469_v62 = vld [vmem:[%s2169_s7 + $0x2c8] sm:$0xff]  ;;  %v387_v5 = vld [vmem:[%s2169_s7 + $0x38] sm:$0xff]  ;;  %v1756_v18 = vcombine.high %v410_v12, %v422_v13 }
  0x60   : > { %1051 = vmatprep.subr.bf16.mxu0 %v1724_v7  ;;  %1094 = vmatprep.subr.bf16.mxu1 %v1726_v8  ;;  %v1800_v1 = vcombine.high %v456_v59, %v468_v60  ;;  %v1802_v2 = vcombine.high %v457_v61, %v469_v62  ;;  %v399_v6 = vld [vmem:[%s2169_s7 + $0x98] sm:$0xff]  ;;  %v1799_v7 = vcombine.low %v456_v59, %v468_v60  ;;  %v446_v21 = vld [vmem:[%s2169_s7 + $0x210] sm:$0xff]  ;;  %v388_v37 = vld [vmem:[%s2169_s7 + $0x40] sm:$0xff] }
  0x61   : > { %v1801_v8 = vcombine.low %v457_v61, %v469_v62  ;;  %v1734_v10 = vcombine.high %v387_v5, %v399_v6  ;;  %v1780_v26 = vcombine.high %v434_v20, %v446_v21  ;;  %v458_v28 = vld [vmem:[%s2169_s7 + $0x270] sm:$0xff]  ;;  %v400_v38 = vld [vmem:[%s2169_s7 + $0xa0] sm:$0xff] }
  0x62   : > { %1815 = vmatmul.mubr.msk.bf16.vlgmr.msra.gmra.mrb[0].mxu0 %vm961_vm0, %v2196_v11  ;;  %1816 = vmatmul.mubr.msk.bf16.vlgmr.msra.gmra.mrb[0].mxu1 %vm961_vm0, %v2196_v11  ;;  %v470_v29 = vld [vmem:[%s2169_s7 + $0x2d0] sm:$0xff]  ;;  %v1736_v43 = vcombine.high %v388_v37, %v400_v38  ;;  %v412_v45 = vld [vmem:[%s2169_s7 + $0x100] sm:$0xff] }
  0x63   : > { %1052 = vmatpush1.bf16.msra.mxu0 %v1723_v14  ;;  %1095 = vmatpush1.bf16.msra.mxu1 %v1725_v15  ;;  %v411_v14 = vld [vmem:[%s2169_s7 + $0xf8] sm:$0xff]  ;;  %v1804_v35 = vcombine.high %v458_v28, %v470_v29  ;;  %v424_v46 = vld [vmem:[%s2169_s7 + $0x160] sm:$0xff] }
  0x64   : > { %1053 = vmatprep.subr.bf16.mxu0 %v1748_v16  ;;  %1096 = vmatprep.subr.bf16.mxu1 %v1750_v17  ;;  %v423_v15 = vld [vmem:[%s2169_s7 + $0x158] sm:$0xff]  ;;  %v1731_v16 = vcombine.low %v386_v3, %v398_v4  ;;  %v1733_v17 = vcombine.low %v387_v5, %v399_v6  ;;  %v1760_v51 = vcombine.high %v412_v45, %v424_v46  ;;  %v436_v53 = vld [vmem:[%s2169_s7 + $0x1c0] sm:$0xff]  ;;  %v390_v5 = vld [vmem:[%s2169_s7 + $0x50] sm:$0xff] }
  0x65   : > { %1083 = vmatprep.mubr.bf16.mxu0 %v1898_v32  ;;  %1126 = vmatprep.mubr.bf16.mxu1 %v1898_v32  ;;  %v1758_v19 = vcombine.high %v411_v14, %v423_v15  ;;  %v448_v54 = vld [vmem:[%s2169_s7 + $0x220] sm:$0xff]  ;;  %v402_v6 = vld [vmem:[%s2169_s7 + $0xb0] sm:$0xff] }
  0x66   : > { %v1784_v59 = vcombine.high %v436_v53, %v448_v54  ;;  %v460_v61 = vld [vmem:[%s2169_s7 + $0x280] sm:$0xff] }
  0x67   : > { %1054 = vmatpush1.bf16.msra.mxu0 %v1747_v22  ;;  %1097 = vmatpush1.bf16.msra.mxu1 %v1749_v23  ;;  %v435_v22 = vld [vmem:[%s2169_s7 + $0x1b8] sm:$0xff]  ;;  %v472_v62 = vld [vmem:[%s2169_s7 + $0x2e0] sm:$0xff] }
  0x68   : > { %1055 = vmatprep.subr.bf16.mxu0 %v1772_v24  ;;  %1098 = vmatprep.subr.bf16.mxu1 %v1774_v25  ;;  %v447_v23 = vld [vmem:[%s2169_s7 + $0x218] sm:$0xff]  ;;  %v1755_v24 = vcombine.low %v410_v12, %v422_v13  ;;  %v1757_v25 = vcombine.low %v411_v14, %v423_v15  ;;  %v1808_v3 = vcombine.high %v460_v61, %v472_v62  ;;  %v414_v14 = vld [vmem:[%s2169_s7 + $0x110] sm:$0xff] }
  0x69   : > { %v1782_v27 = vcombine.high %v435_v22, %v447_v23  ;;  %v1740_v12 = vcombine.high %v390_v5, %v402_v6  ;;  %v426_v15 = vld [vmem:[%s2169_s7 + $0x170] sm:$0xff] }
  0x6b   : > { %1056 = vmatpush1.bf16.msra.mxu0 %v1771_v30  ;;  %1099 = vmatpush1.bf16.msra.mxu1 %v1773_v31  ;;  %v459_v30 = vld [vmem:[%s2169_s7 + $0x278] sm:$0xff] }
  0x6c   : > { %1057 = vmatprep.subr.bf16.mxu0 %v1796_v33  ;;  %1100 = vmatprep.subr.bf16.mxu1 %v1798_v34  ;;  %v471_v31 = vld [vmem:[%s2169_s7 + $0x2d8] sm:$0xff]  ;;  %v1779_v33 = vcombine.low %v434_v20, %v446_v21  ;;  %v1781_v34 = vcombine.low %v435_v22, %v447_v23  ;;  %v1764_v20 = vcombine.high %v414_v14, %v426_v15  ;;  %v438_v22 = vld [vmem:[%s2169_s7 + $0x1d0] sm:$0xff] }
  0x6d   : > { %v1806_v36 = vcombine.high %v459_v30, %v471_v31  ;;  %v450_v23 = vld [vmem:[%s2169_s7 + $0x230] sm:$0xff] }
  0x6f   : > { %1058 = vmatpush1.bf16.msra.mxu0 %v1795_v39  ;;  %1101 = vmatpush1.bf16.msra.mxu1 %v1797_v40  ;;  %v389_v39 = vld [vmem:[%s2169_s7 + $0x48] sm:$0xff] }
  0x70   : > { %1137 = vmatprep.subr.bf16.mxu0 %v1728_v41  ;;  %1180 = vmatprep.subr.bf16.mxu1 %v1730_v42  ;;  %v401_v40 = vld [vmem:[%s2169_s7 + $0xa8] sm:$0xff]  ;;  %v1803_v41 = vcombine.low %v458_v28, %v470_v29  ;;  %v1805_v42 = vcombine.low %v459_v30, %v471_v31  ;;  %v1788_v28 = vcombine.high %v438_v22, %v450_v23  ;;  %v462_v30 = vld [vmem:[%s2169_s7 + $0x290] sm:$0xff] }
  0x71   : > { %v1738_v44 = vcombine.high %v389_v39, %v401_v40  ;;  %v474_v31 = vld [vmem:[%s2169_s7 + $0x2f0] sm:$0xff] }
  0x72   : > { %1817 = vmatmul.mubr.msk.bf16.vlgmr.msra.gmra.mrb[4].mxu0 %vm961_vm0, %v2196_v11  ;;  %1818 = vmatmul.mubr.msk.bf16.vlgmr.msra.gmra.mrb[4].mxu1 %vm961_vm0, %v2196_v11 }
  0x73   : > { %1138 = vmatpush1.bf16.msra.mxu0 %v1727_v47  ;;  %1181 = vmatpush1.bf16.msra.mxu1 %v1729_v48  ;;  %v413_v47 = vld [vmem:[%s2169_s7 + $0x108] sm:$0xff] }
  0x74   : > { %1139 = vmatprep.subr.bf16.mxu0 %v1752_v49  ;;  %1182 = vmatprep.subr.bf16.mxu1 %v1754_v50  ;;  %v425_v48 = vld [vmem:[%s2169_s7 + $0x168] sm:$0xff]  ;;  %v1735_v49 = vcombine.low %v388_v37, %v400_v38  ;;  %v1737_v50 = vcombine.low %v389_v39, %v401_v40  ;;  %v1812_v37 = vcombine.high %v462_v30, %v474_v31 }
  0x75   : > { %1169 = vmatprep.mubr.bf16.mxu0 %v1898_v32  ;;  %1212 = vmatprep.mubr.bf16.mxu1 %v1898_v32  ;;  %v1762_v52 = vcombine.high %v413_v47, %v425_v48  ;;  %v1811_v39 = vcombine.low %v462_v30, %v474_v31 }
  0x77   : > { %1140 = vmatpush1.bf16.msra.mxu0 %v1751_v55  ;;  %1183 = vmatpush1.bf16.msra.mxu1 %v1753_v56  ;;  %v437_v55 = vld [vmem:[%s2169_s7 + $0x1c8] sm:$0xff] }
  0x78   : > { %1141 = vmatprep.subr.bf16.mxu0 %v1776_v57  ;;  %1184 = vmatprep.subr.bf16.mxu1 %v1778_v58  ;;  %v449_v56 = vld [vmem:[%s2169_s7 + $0x228] sm:$0xff]  ;;  %v1759_v57 = vcombine.low %v412_v45, %v424_v46  ;;  %v1761_v58 = vcombine.low %v413_v47, %v425_v48 }
  0x79   : > { %v1786_v60 = vcombine.high %v437_v55, %v449_v56 }
  0x7b   : > { %1142 = vmatpush1.bf16.msra.mxu0 %v1775_v63  ;;  %1185 = vmatpush1.bf16.msra.mxu1 %v1777_v0  ;;  %v461_v63 = vld [vmem:[%s2169_s7 + $0x288] sm:$0xff] }
  0x7c   : > { %1143 = vmatprep.subr.bf16.mxu0 %v1800_v1  ;;  %1186 = vmatprep.subr.bf16.mxu1 %v1802_v2  ;;  %v473_v0 = vld [vmem:[%s2169_s7 + $0x2e8] sm:$0xff]  ;;  %v1783_v1 = vcombine.low %v436_v53, %v448_v54  ;;  %v1785_v2 = vcombine.low %v437_v55, %v449_v56 }
  0x7d   : > { %v1810_v4 = vcombine.high %v461_v63, %v473_v0 }
  0x7f   : > { %1144 = vmatpush1.bf16.msra.mxu0 %v1799_v7  ;;  %1187 = vmatpush1.bf16.msra.mxu1 %v1801_v8  ;;  %v391_v7 = vld [vmem:[%s2169_s7 + $0x58] sm:$0xff] }
  0x80   : > { %1223 = vmatprep.subr.bf16.mxu0 %v1732_v9  ;;  %1266 = vmatprep.subr.bf16.mxu1 %v1734_v10  ;;  %v403_v8 = vld [vmem:[%s2169_s7 + $0xb8] sm:$0xff]  ;;  %v1807_v9 = vcombine.low %v460_v61, %v472_v62  ;;  %v1809_v10 = vcombine.low %v461_v63, %v473_v0 }
  0x81   : > { %v1742_v13 = vcombine.high %v391_v7, %v403_v8 }
  0x82   : > { %1819 = vmatmul.mubr.msk.bf16.vlgmr.msra.gmra.mrb[8].mxu0 %vm961_vm0, %v2196_v11  ;;  %1820 = vmatmul.mubr.msk.bf16.vlgmr.msra.gmra.mrb[8].mxu1 %vm961_vm0, %v2196_v11 }
  0x83   : > { %1224 = vmatpush1.bf16.msra.mxu0 %v1731_v16  ;;  %1267 = vmatpush1.bf16.msra.mxu1 %v1733_v17  ;;  %v415_v16 = vld [vmem:[%s2169_s7 + $0x118] sm:$0xff] }
  0x84   : > { %1225 = vmatprep.subr.bf16.mxu0 %v1756_v18  ;;  %1268 = vmatprep.subr.bf16.mxu1 %v1758_v19  ;;  %v427_v17 = vld [vmem:[%s2169_s7 + $0x178] sm:$0xff]  ;;  %v1739_v18 = vcombine.low %v390_v5, %v402_v6  ;;  %v1741_v19 = vcombine.low %v391_v7, %v403_v8 }
  0x85   : > { %1255 = vmatprep.mubr.bf16.mxu0 %v1898_v32  ;;  %1298 = vmatprep.mubr.bf16.mxu1 %v1898_v32  ;;  %v1766_v21 = vcombine.high %v415_v16, %v427_v17 }
  0x87   : > { %1226 = vmatpush1.bf16.msra.mxu0 %v1755_v24  ;;  %1269 = vmatpush1.bf16.msra.mxu1 %v1757_v25  ;;  %v439_v24 = vld [vmem:[%s2169_s7 + $0x1d8] sm:$0xff] }
  0x88   : > { %1227 = vmatprep.subr.bf16.mxu0 %v1780_v26  ;;  %1270 = vmatprep.subr.bf16.mxu1 %v1782_v27  ;;  %v451_v25 = vld [vmem:[%s2169_s7 + $0x238] sm:$0xff]  ;;  %v1763_v26 = vcombine.low %v414_v14, %v426_v15  ;;  %v1765_v27 = vcombine.low %v415_v16, %v427_v17 }
  0x89   : > { %v1790_v29 = vcombine.high %v439_v24, %v451_v25 }
  0x8b   : > { %1228 = vmatpush1.bf16.msra.mxu0 %v1779_v33  ;;  %1271 = vmatpush1.bf16.msra.mxu1 %v1781_v34  ;;  %v463_v33 = vld [vmem:[%s2169_s7 + $0x298] sm:$0xff] }
  0x8c   : > { %1229 = vmatprep.subr.bf16.mxu0 %v1804_v35  ;;  %1272 = vmatprep.subr.bf16.mxu1 %v1806_v36  ;;  %v475_v34 = vld [vmem:[%s2169_s7 + $0x2f8] sm:$0xff]  ;;  %v1787_v35 = vcombine.low %v438_v22, %v450_v23  ;;  %v1789_v36 = vcombine.low %v439_v24, %v451_v25 }
  0x8d   : > { %v1814_v38 = vcombine.high %v463_v33, %v475_v34  ;;  %v1813_v40 = vcombine.low %v463_v33, %v475_v34 }
  0x8f   : > { %1230 = vmatpush1.bf16.msra.mxu0 %v1803_v41  ;;  %1273 = vmatpush1.bf16.msra.mxu1 %v1805_v42 }
  0x90   : > { %1309 = vmatprep.subr.bf16.mxu0 %v1736_v43  ;;  %1352 = vmatprep.subr.bf16.mxu1 %v1738_v44 }
  0x92   : > { %1821 = vmatmul.mubr.msk.bf16.vlgmr.msra.gmra.mrb[12].mxu0 %vm961_vm0, %v2196_v11  ;;  %1822 = vmatmul.mubr.msk.bf16.vlgmr.msra.gmra.mrb[12].mxu1 %vm961_vm0, %v2196_v11 }
  0x93   : > { %1310 = vmatpush1.bf16.msra.mxu0 %v1735_v49  ;;  %1353 = vmatpush1.bf16.msra.mxu1 %v1737_v50 }
  0x94   : > { %1311 = vmatprep.subr.bf16.mxu0 %v1760_v51  ;;  %1354 = vmatprep.subr.bf16.mxu1 %v1762_v52 }
  0x95   : > { %1341 = vmatprep.mubr.bf16.mxu0 %v1898_v32  ;;  %1384 = vmatprep.mubr.bf16.mxu1 %v1898_v32 }
  0x97   : > { %1312 = vmatpush1.bf16.msra.mxu0 %v1759_v57  ;;  %1355 = vmatpush1.bf16.msra.mxu1 %v1761_v58 }
  0x98   : > { %1313 = vmatprep.subr.bf16.mxu0 %v1784_v59  ;;  %1356 = vmatprep.subr.bf16.mxu1 %v1786_v60 }
  0x9b   : > { %1314 = vmatpush1.bf16.msra.mxu0 %v1783_v1  ;;  %1357 = vmatpush1.bf16.msra.mxu1 %v1785_v2 }
  0x9c   : > { %1315 = vmatprep.subr.bf16.mxu0 %v1808_v3  ;;  %1358 = vmatprep.subr.bf16.mxu1 %v1810_v4 }
  0x9f   : > { %1316 = vmatpush1.bf16.msra.mxu0 %v1807_v9  ;;  %1359 = vmatpush1.bf16.msra.mxu1 %v1809_v10 }
  0xa0   : > { %1395 = vmatprep.subr.bf16.mxu0 %v1740_v12  ;;  %1438 = vmatprep.subr.bf16.mxu1 %v1742_v13 }
  0xa2   : > { %1823 = vmatmul.mubr.msk.bf16.vlgmr.msra.gmra.mrb[16].mxu0 %vm961_vm0, %v2196_v11  ;;  %1824 = vmatmul.mubr.msk.bf16.vlgmr.msra.gmra.mrb[16].mxu1 %vm961_vm0, %v2196_v11 }
  0xa3   : > { %1396 = vmatpush1.bf16.msra.mxu0 %v1739_v18  ;;  %1439 = vmatpush1.bf16.msra.mxu1 %v1741_v19 }
  0xa4   : > { %1397 = vmatprep.subr.bf16.mxu0 %v1764_v20  ;;  %1440 = vmatprep.subr.bf16.mxu1 %v1766_v21 }
  0xa5   : > { %1427 = vmatprep.mubr.bf16.mxu0 %v1898_v32  ;;  %1470 = vmatprep.mubr.bf16.mxu1 %v1898_v32 }
  0xa7   : > { %1398 = vmatpush1.bf16.msra.mxu0 %v1763_v26  ;;  %1441 = vmatpush1.bf16.msra.mxu1 %v1765_v27 }
  0xa8   : > { %1399 = vmatprep.subr.bf16.mxu0 %v1788_v28  ;;  %1442 = vmatprep.subr.bf16.mxu1 %v1790_v29 }
  0xab   : > { %1400 = vmatpush1.bf16.msra.mxu0 %v1787_v35  ;;  %1443 = vmatpush1.bf16.msra.mxu1 %v1789_v36 }
  0xac   : > { %1401 = vmatprep.subr.bf16.mxu0 %v1812_v37  ;;  %1444 = vmatprep.subr.bf16.mxu1 %v1814_v38 }
  0xaf   : > { %1402 = vmatpush1.bf16.msra.mxu0 %v1811_v39  ;;  %1445 = vmatpush1.bf16.msra.mxu1 %v1813_v40 }
  0xb2   : > { %1825 = vmatmul.mubr.msk.bf16.vlgmr.msra.gmra.mrb[20].mxu0 %vm961_vm0, %v2196_v11  ;;  %1826 = vmatmul.mubr.msk.bf16.vlgmr.msra.gmra.mrb[20].mxu1 %vm961_vm0, %v2196_v11 }
  0xcb   : > { %v1522_v28 = vpop.permute.xlu0 %1521 }
  0xcf   : > { %v2312_v30 = vpop.permute.xlu0 %1526 }
 0x135   : > { %v999_v32 = vpop.f32.mrb[0].mxu0  ;;  %v1042_v41 = vpop.f32.mrb[0].mxu1 }
 0x136   : > { %v1001_v42 = vpop.f32.mrb[1].mxu0  ;;  %v1044_v43 = vpop.f32.mrb[1].mxu1 }
 0x137   : > { %v1003_v44 = vpop.f32.mrb[2].mxu0  ;;  %v1046_v45 = vpop.f32.mrb[2].mxu1 }
 0x138   : > { %v1005_v46 = vpop.f32.mrb[3].mxu0  ;;  %v1048_v47 = vpop.f32.mrb[3].mxu1 }
 0x145   : > { %v1085_v48 = vpop.f32.mrb[4].mxu0  ;;  %v1128_v49 = vpop.f32.mrb[4].mxu1 }
 0x146   : > { %v1087_v50 = vpop.f32.mrb[5].mxu0  ;;  %v1481_v51 = vmax.f32 %v999_v32, %v1128_v49  ;;  %v1130_v52 = vpop.f32.mrb[5].mxu1 }
 0x147   : > { %v1089_v53 = vpop.f32.mrb[6].mxu0  ;;  %v1482_v54 = vmax.f32 %v1001_v42, %v1130_v52  ;;  %v1132_v55 = vpop.f32.mrb[6].mxu1 }
 0x148   : > { %v1091_v56 = vpop.f32.mrb[7].mxu0  ;;  %v1487_v57 = vmax.f32 %v1003_v44, %v1132_v55  ;;  %v1134_v58 = vpop.f32.mrb[7].mxu1 }
 0x149   : > { %v1488_v11 = vmax.f32 %v1005_v46, %v1134_v58 }
 0x155   : > { %v1171_v59 = vpop.f32.mrb[8].mxu0  ;;  %v1214_v61 = vpop.f32.mrb[8].mxu1 }
 0x156   : > { %v1483_v60 = vmax.f32 %v1042_v41, %v1171_v59  ;;  %v1173_v62 = vpop.f32.mrb[9].mxu0  ;;  %v1485_v63 = vmax.f32 %v1085_v48, %v1214_v61  ;;  %v1216_v1 = vpop.f32.mrb[9].mxu1 }
 0x157   : > { %v1484_v0 = vmax.f32 %v1044_v43, %v1173_v62  ;;  %v1175_v2 = vpop.f32.mrb[10].mxu0  ;;  %v1486_v3 = vmax.f32 %v1087_v50, %v1216_v1  ;;  %v1218_v5 = vpop.f32.mrb[10].mxu1 }
 0x158   : > { %v1489_v4 = vmax.f32 %v1046_v45, %v1175_v2  ;;  %v1177_v6 = vpop.f32.mrb[11].mxu0  ;;  %v1491_v7 = vmax.f32 %v1089_v53, %v1218_v5  ;;  %v1220_v9 = vpop.f32.mrb[11].mxu1 }
 0x159   : > { %v1490_v8 = vmax.f32 %v1048_v47, %v1177_v6  ;;  %v1492_v10 = vmax.f32 %v1091_v56, %v1220_v9 }
 0x165   : > { %v1257_v12 = vpop.f32.mrb[12].mxu0  ;;  %v1300_v14 = vpop.f32.mrb[12].mxu1 }
 0x166   : > { %v1493_v13 = vmax.f32 %v1481_v51, %v1257_v12  ;;  %v1259_v15 = vpop.f32.mrb[13].mxu0  ;;  %v1495_v16 = vmax.f32 %v1483_v60, %v1300_v14  ;;  %v1302_v18 = vpop.f32.mrb[13].mxu1 }
 0x167   : > { %v1494_v17 = vmax.f32 %v1482_v54, %v1259_v15  ;;  %v1261_v19 = vpop.f32.mrb[14].mxu0  ;;  %v2306_v20 = vmax.f32 %v1484_v0, %v1302_v18  ;;  %v1304_v22 = vpop.f32.mrb[14].mxu1 }
 0x168   : > { %v1499_v21 = vmax.f32 %v1487_v57, %v1261_v19  ;;  %v1263_v23 = vpop.f32.mrb[15].mxu0  ;;  %v2308_v24 = vmax.f32 %v1489_v4, %v1304_v22  ;;  %v1306_v26 = vpop.f32.mrb[15].mxu1 }
 0x169   : > { %v1500_v25 = vmax.f32 %v1488_v11, %v1263_v23  ;;  %v2310_v27 = vmax.f32 %v1490_v8, %v1306_v26 }
 0x175   : > { %v1343_v29 = vpop.f32.mrb[16].mxu0  ;;  %v1386_v33 = vpop.f32.mrb[16].mxu1 }
 0x176   : > { %v1497_v31 = vmax.f32 %v1485_v63, %v1343_v29  ;;  %v1345_v34 = vpop.f32.mrb[17].mxu0  ;;  %v1505_v35 = vmax.f32 %v1493_v13, %v1386_v33  ;;  %v1388_v37 = vpop.f32.mrb[17].mxu1 }
 0x177   : > { %v1498_v36 = vmax.f32 %v1486_v3, %v1345_v34  ;;  %v1347_v38 = vpop.f32.mrb[18].mxu0  ;;  %v1506_v39 = vmax.f32 %v1494_v17, %v1388_v37  ;;  %v1390_v32 = vpop.f32.mrb[18].mxu1 }
 0x178   : > { %v2314_v40 = vmax.f32 %v1491_v7, %v1347_v38  ;;  %v1349_v41 = vpop.f32.mrb[19].mxu0  ;;  %v1529_v42 = vadd.f32 %v1522_v28, %v1505_v35  ;;  %v1511_v43 = vmax.f32 %v1499_v21, %v1390_v32  ;;  %v1392_v45 = vpop.f32.mrb[19].mxu1 }
 0x179   : > { %v2316_v44 = vmax.f32 %v1492_v10, %v1349_v41  ;;  %v1530_v46 = vadd.f32 %v1522_v28, %v1506_v39  ;;  %v1512_v47 = vmax.f32 %v1500_v25, %v1392_v45 }
 0x17a   : > { %vm1541_vm1 = vcmp.ge.f32.partialorder %v1529_v42, 0.0  ;;  %v1553_v48 = vmul.f32 0.1, %v1529_v42  ;;  %v1535_v49 = vadd.f32 %v2312_v30, %v1511_v43 }
 0x17b   : > { %vm1542_vm2 = vcmp.ge.f32.partialorder %v1530_v46, 0.0  ;;  %v1554_v50 = vmul.f32 0.1, %v1530_v46  ;;  %v1536_v51 = vadd.f32 %v2312_v30, %v1512_v47 }
 0x17c   : > { %v1565_v52 = vsel %vm1541_vm1, %v1529_v42, %v1553_v48  ;;  %vm1547_vm3 = vcmp.ge.f32.partialorder %v1535_v49, 0.0  ;;  %v1559_v53 = vmul.f32 0.1, %v1535_v49 }
 0x17d   : > { %v1566_v54 = vsel %vm1542_vm2, %v1530_v46, %v1554_v50  ;;  %vm1548_vm4 = vcmp.ge.f32.partialorder %v1536_v51, 0.0  ;;  %v1560_v55 = vmul.f32 0.1, %v1536_v51 }
 0x17e   : > { %v1837_v56 = vpack.c.bf16 %v1566_v54, %v1565_v52  ;;  %v1571_v57 = vsel %vm1547_vm3, %v1535_v49, %v1559_v53 }
 0x17f   : > { %v1572_v58 = vsel %vm1548_vm4, %v1536_v51, %v1560_v55 }
 0x180   : > { %1613 = vst [vmem:[%s2322_s11] sm:$0xff] %v1837_v56  ;;  %v1840_v11 = vpack.c.bf16 %v1572_v58, %v1571_v57 }
 0x182   : > { %1616 = vst [vmem:[%s2322_s11 + $0x18] sm:$0xff] %v1840_v11 }
 0x185   : > { %v1429_v59 = vpop.f32.mrb[20].mxu0  ;;  %v1472_v61 = vpop.f32.mrb[20].mxu1 }
 0x186   : > { %v1507_v60 = vmax.f32 %v1495_v16, %v1429_v59  ;;  %v1431_v62 = vpop.f32.mrb[21].mxu0  ;;  %v1509_v63 = vmax.f32 %v1497_v31, %v1472_v61  ;;  %v1474_v1 = vpop.f32.mrb[21].mxu1 }
 0x187   : > { %v1508_v0 = vmax.f32 %v2306_v20, %v1431_v62  ;;  %v1433_v2 = vpop.f32.mrb[22].mxu0  ;;  %v1510_v4 = vmax.f32 %v1498_v36, %v1474_v1  ;;  %v1476_v6 = vpop.f32.mrb[22].mxu1 }
 0x188   : > { %v1531_v3 = vadd.f32 %v1522_v28, %v1507_v60  ;;  %v1513_v5 = vmax.f32 %v2308_v24, %v1433_v2  ;;  %v1435_v7 = vpop.f32.mrb[23].mxu0  ;;  %v1533_v8 = vadd.f32 %v1522_v28, %v1509_v63  ;;  %v1515_v10 = vmax.f32 %v2314_v40, %v1476_v6  ;;  %v1478_v13 = vpop.f32.mrb[23].mxu1 }
 0x189   : > { %v1532_v9 = vadd.f32 %v1522_v28, %v1508_v0  ;;  %v1514_v12 = vmax.f32 %v2310_v27, %v1435_v7  ;;  %v1534_v15 = vadd.f32 %v1522_v28, %v1510_v4  ;;  %v1516_v28 = vmax.f32 %v2316_v44, %v1478_v13  ;;  %v1647_v43 = vld [vmem:[%s2322_s11 + $0x18] sm:$0xff] (%p1949_p5) }
 0x18a   : > { %vm1543_vm5 = vcmp.ge.f32.partialorder %v1531_v3, 0.0  ;;  %v1555_v14 = vmul.f32 0.1, %v1531_v3  ;;  %v1537_v16 = vadd.f32 %v2312_v30, %v1513_v5  ;;  %vm1545_vm6 = vcmp.ge.f32.partialorder %v1533_v8, 0.0  ;;  %1648 = vst [vmem:[%s1628_s20 + $0x30] sm:$0xff] (%p1949_p5), %v1647_v43 }
 0x18b   : > { %v1557_v17 = vmul.f32 0.1, %v1533_v8  ;;  %vm1544_vm7 = vcmp.ge.f32.partialorder %v1532_v9, 0.0  ;;  %v1556_v18 = vmul.f32 0.1, %v1532_v9  ;;  %vm1546_vm8 = vcmp.ge.f32.partialorder %v1534_v15, 0.0 }
 0x18c   : > { %v1567_v19 = vsel %vm1543_vm5, %v1531_v3, %v1555_v14  ;;  %v1558_v20 = vmul.f32 0.1, %v1534_v15  ;;  %vm1549_vm9 = vcmp.ge.f32.partialorder %v1537_v16, 0.0  ;;  %v1561_v23 = vmul.f32 0.1, %v1537_v16 }
 0x18d   : > { %v1569_v21 = vsel %vm1545_vm6, %v1533_v8, %v1557_v17  ;;  %v1568_v22 = vsel %vm1544_vm7, %v1532_v9, %v1556_v18  ;;  %v1539_v24 = vadd.f32 %v2312_v30, %v1515_v10  ;;  %v1538_v27 = vadd.f32 %v2312_v30, %v1514_v12 }
 0x18e   : > { %v1838_v25 = vpack.c.bf16 %v1568_v22, %v1567_v19  ;;  %v1570_v26 = vsel %vm1546_vm8, %v1534_v15, %v1558_v20  ;;  %v1573_v33 = vsel %vm1549_vm9, %v1537_v16, %v1561_v23  ;;  %v1540_v35 = vadd.f32 %v2312_v30, %v1516_v28  ;;  %v1641_v30 = vld [vmem:[%s2322_s11] sm:$0xff] (%p1949_p5) }
 0x18f   : > { %v1839_v29 = vpack.c.bf16 %v1570_v26, %v1569_v21  ;;  %vm1551_vm10 = vcmp.ge.f32.partialorder %v1539_v24, 0.0  ;;  %v1563_v31 = vmul.f32 0.1, %v1539_v24  ;;  %vm1550_vm11 = vcmp.ge.f32.partialorder %v1538_v27, 0.0  ;;  %1625 = sbr.rel (!%p1949_p5) target bundleno = 414 (0x19e), region = 59  ;;  %1642 = vst [vmem:[%s1628_s20] sm:$0xff] (%p1949_p5), %v1641_v30 }
 0x190   : > { %1614 = vst [vmem:[%s2322_s11 + $0x8] sm:$0xff] %v1838_v25  ;;  %v1562_v34 = vmul.f32 0.1, %v1538_v27  ;;  %vm1552_vm12 = vcmp.ge.f32.partialorder %v1540_v35, 0.0  ;;  %v1564_v38 = vmul.f32 0.1, %v1540_v35 }
 0x191   : > { %1615 = vst [vmem:[%s2322_s11 + $0x10] sm:$0xff] %v1839_v29  ;;  %v1575_v36 = vsel %vm1551_vm10, %v1539_v24, %v1563_v31 }
 0x192   : > { %v1574_v37 = vsel %vm1550_vm11, %v1538_v27, %v1562_v34  ;;  %v1576_v40 = vsel %vm1552_vm12, %v1540_v35, %v1564_v38 }
 0x193   : > { %v1841_v39 = vpack.c.bf16 %v1574_v37, %v1573_v33  ;;  %v1842_v32 = vpack.c.bf16 %v1576_v40, %v1575_v36 }
 0x195   : > { %1617 = vst [vmem:[%s2322_s11 + $0x20] sm:$0xff] %v1841_v39  ;;  %1618 = vst [vmem:[%s2322_s11 + $0x28] sm:$0xff] %v1842_v32 }
 0x197   : > { %v1643_v41 = vld [vmem:[%s2322_s11 + $0x8] sm:$0xff] }
 0x198   : > { %v1645_v42 = vld [vmem:[%s2322_s11 + $0x10] sm:$0xff]  ;;  %1644 = vst [vmem:[%s1628_s20 + $0x8] sm:$0xff] %v1643_v41 }
 0x199   : > { %1646 = vst [vmem:[%s1628_s20 + $0x10] sm:$0xff] %v1645_v42 }
 0x19c   : > { %v1649_v44 = vld [vmem:[%s2322_s11 + $0x20] sm:$0xff]  ;;  %v1651_v45 = vld [vmem:[%s2322_s11 + $0x28] sm:$0xff] }
 0x19d   : > { %1650 = vst [vmem:[%s1628_s20 + $0x38] sm:$0xff] %v1649_v44  ;;  %1652 = vst [vmem:[%s1628_s20 + $0x40] sm:$0xff] %v1651_v45 }
 0x19e PF: > { %p10_p10 = scmp.ge.s32.totalorder %s1936_s16, 4   ;;  %s2367_s12 = smov %s1892_s13 }
 0x19f   : > { %s2368_s13 = smov %s1947_s19  ;;  %s2369_s14 = smov %s1936_s16 }
 0x1a0   :  { %12 = sbr.rel (!%p10_p10) target bundleno = 2 (0x2), region = 113 }

// kernel: cnn_forward.3
= control target key start
LH: loop header
LB: loop body
LE: loop exit
PB: predicated region body
PF: predicated region fallthrough
CT: control target
= control target key end

     0   :  { %v1554_v1 = vmov 0   ;;  %vm891_vm1 = vcmask 588800   ;;  %vm1053_vm5 = vcmask 1041409   ;;  %vm1055_vm6 = vcmask 1042434   ;;  %s2119_s0 = inlined_call_operand.vmem [shape: bf16[4,256,72], index: 0, kind: input, shape index: {}]   ;;  %s2120_s1 = inlined_call_operand.vmem [shape: bf16[32,256], index: 1, kind: input, shape index: {}]   ;;  %s2121_s2 = inlined_call_operand.vmem [shape: f32[32,1], index: 2, kind: input, shape index: {}]   ;;  %s2122_s5 = inlined_call_operand.vmem [shape: f32[10,1], index: 5, kind: input, shape index: {}]   ;;  %s2123_s4 = inlined_call_operand.vmem [shape: f32[72,2], index: 4, kind: input, shape index: {}]   ;;  %s2124_s3 = inlined_call_operand.vmem [shape: f32[10,32,72], index: 3, kind: input, shape index: {}]   ;;  %s2125_s6 = inlined_call_operand.vmem [shape: f32[10,2], index: 6, kind: output, shape index: {}]  }
   0x1   :  { %v1484_v0 = vld [vmem:[%s2119_s0 + $0x40] sm:$0xff]   ;;  %1482 = vset.pattern.permute.xlu0 %v1554_v1  ;;  %1483 = vset.pattern.permute.xlu1 %v1554_v1  ;;  %v1488_v5 = vld [vmem:[%s2119_s0 + $0x48] sm:$0xff]   ;;  %v1492_v9 = vld [vmem:[%s2119_s0 + $0x50] sm:$0xff]   ;;  %vm1057_vm7 = vcmask 1043459   ;;  %vm1059_vm8 = vcmask 1044484   ;;  %vm1061_vm9 = vcmask 1045509  }
   0x2   :  { %v1485_v2 = vld [vmem:[%s2119_s0 + $0xc0] sm:$0xff]   ;;  %1321 = vmatprep.subr.bf16.mxu0 %v1484_v0  ;;  %v1489_v6 = vld [vmem:[%s2119_s0 + $0xc8] sm:$0xff]   ;;  %v1493_v10 = vld [vmem:[%s2119_s0 + $0xd0] sm:$0xff]   ;;  %vm1063_vm10 = vcmask 1046534   ;;  %vm1065_vm11 = vcmask 1047559   ;;  %vm1149_vm12 = vcmask 9216  }
   0x3   :  { %v1486_v3 = vld [vmem:[%s2119_s0] sm:$0xff]   ;;  %1349 = vmatprep.subr.bf16.mxu1 %v1485_v2  ;;  %v1490_v7 = vld [vmem:[%s2119_s0 + $0x8] sm:$0xff]   ;;  %v1494_v11 = vld [vmem:[%s2119_s0 + $0x10] sm:$0xff]   ;;  %vm1147_vm13 = vcmask 15360  }
   0x4   :  { %v1487_v4 = vld [vmem:[%s2119_s0 + $0x80] sm:$0xff]   ;;  %1322 = vmatpush3.bf16.msra.mxu0 %v1486_v3  ;;  %v1491_v8 = vld [vmem:[%s2119_s0 + $0x88] sm:$0xff]   ;;  %v1495_v12 = vld [vmem:[%s2119_s0 + $0x90] sm:$0xff]  }
   0x5   :  { %1350 = vmatpush3.bf16.msra.mxu1 %v1487_v4  ;;  %1323 = vmatprep.subr.bf16.mxu0 %v1488_v5  ;;  %v1496_v13 = vld [vmem:[%s2119_s0 + $0x58] sm:$0xff]   ;;  %v1500_v17 = vld [vmem:[%s2119_s0 + $0x60] sm:$0xff]   ;;  %v1504_v21 = vld [vmem:[%s2119_s0 + $0x68] sm:$0xff]  }
   0x6   :  { %1351 = vmatprep.subr.bf16.mxu1 %v1489_v6  ;;  %v1497_v14 = vld [vmem:[%s2119_s0 + $0xd8] sm:$0xff]   ;;  %v1501_v18 = vld [vmem:[%s2119_s0 + $0xe0] sm:$0xff]   ;;  %v1505_v22 = vld [vmem:[%s2119_s0 + $0xe8] sm:$0xff]  }
   0x7   :  { %v1498_v15 = vld [vmem:[%s2119_s0 + $0x18] sm:$0xff]   ;;  %v1502_v19 = vld [vmem:[%s2119_s0 + $0x20] sm:$0xff]   ;;  %v1506_v23 = vld [vmem:[%s2119_s0 + $0x28] sm:$0xff]  }
   0x8   :  { %1324 = vmatpush3.bf16.msra.mxu0 %v1490_v7  ;;  %v1499_v16 = vld [vmem:[%s2119_s0 + $0x98] sm:$0xff]   ;;  %v1503_v20 = vld [vmem:[%s2119_s0 + $0xa0] sm:$0xff]   ;;  %v1507_v24 = vld [vmem:[%s2119_s0 + $0xa8] sm:$0xff]  }
   0x9   :  { %1352 = vmatpush3.bf16.msra.mxu1 %v1491_v8  ;;  %1325 = vmatprep.subr.bf16.mxu0 %v1492_v9  ;;  %v1508_v25 = vld [vmem:[%s2119_s0 + $0x70] sm:$0xff]   ;;  %v1512_v29 = vld [vmem:[%s2119_s0 + $0x78] sm:$0xff]   ;;  %v1689_v33 = vld [vmem:[%s2120_s1 + $0x4] ss:$8 sps:$4 sm:$0xff]  }
   0xa   :  { %1353 = vmatprep.subr.bf16.mxu1 %v1493_v10  ;;  %v1509_v26 = vld [vmem:[%s2119_s0 + $0xf0] sm:$0xff]   ;;  %v1513_v30 = vld [vmem:[%s2119_s0 + $0xf8] sm:$0xff]   ;;  %v1694_v34 = vld [vmem:[%s2120_s1] ss:$8 sps:$4 sm:$0xff]   ;;  %208 = vmatprep.mubr.bf16.mxu0 %v1689_v33 }
   0xb   :  { %v1510_v27 = vld [vmem:[%s2119_s0 + $0x30] sm:$0xff]   ;;  %v1514_v31 = vld [vmem:[%s2119_s0 + $0x38] sm:$0xff]   ;;  %386 = vmatprep.mubr.bf16.mxu1 %v1689_v33  ;;  %v1519_v35 = vld [vmem:[%s2119_s0 + $0x140] sm:$0xff]  }
   0xc   :  { %1326 = vmatpush3.bf16.msra.mxu0 %v1494_v11  ;;  %v1511_v28 = vld [vmem:[%s2119_s0 + $0xb0] sm:$0xff]   ;;  %v1515_v32 = vld [vmem:[%s2119_s0 + $0xb8] sm:$0xff]   ;;  %v1520_v36 = vld [vmem:[%s2119_s0 + $0x1c0] sm:$0xff]  }
   0xd   :  { %1354 = vmatpush3.bf16.msra.mxu1 %v1495_v12  ;;  %1327 = vmatprep.subr.bf16.mxu0 %v1496_v13  ;;  %v1521_v37 = vld [vmem:[%s2119_s0 + $0x100] sm:$0xff]   ;;  %v1523_v39 = vld [vmem:[%s2119_s0 + $0x148] sm:$0xff]   ;;  %v1527_v43 = vld [vmem:[%s2119_s0 + $0x150] sm:$0xff]  }
   0xe   :  { %1355 = vmatprep.subr.bf16.mxu1 %v1497_v14  ;;  %v1522_v38 = vld [vmem:[%s2119_s0 + $0x180] sm:$0xff]   ;;  %v1524_v40 = vld [vmem:[%s2119_s0 + $0x1c8] sm:$0xff]   ;;  %v1528_v44 = vld [vmem:[%s2119_s0 + $0x1d0] sm:$0xff]  }
   0xf   :  { %v1525_v41 = vld [vmem:[%s2119_s0 + $0x108] sm:$0xff]   ;;  %v1529_v45 = vld [vmem:[%s2119_s0 + $0x110] sm:$0xff]   ;;  %v1531_v47 = vld [vmem:[%s2119_s0 + $0x158] sm:$0xff]  }
  0x10   :  { %1328 = vmatpush3.bf16.msra.mxu0 %v1498_v15  ;;  %v1526_v42 = vld [vmem:[%s2119_s0 + $0x188] sm:$0xff]   ;;  %v1530_v46 = vld [vmem:[%s2119_s0 + $0x190] sm:$0xff]   ;;  %v1532_v48 = vld [vmem:[%s2119_s0 + $0x1d8] sm:$0xff]  }
  0x11   :  { %1356 = vmatpush3.bf16.msra.mxu1 %v1499_v16  ;;  %1329 = vmatprep.subr.bf16.mxu0 %v1500_v17  ;;  %v1533_v49 = vld [vmem:[%s2119_s0 + $0x118] sm:$0xff]   ;;  %v1535_v51 = vld [vmem:[%s2119_s0 + $0x160] sm:$0xff]   ;;  %v1541_v56 = vld [vmem:[%s2119_s0 + $0x168] sm:$0xff]  }
  0x12   :  { %1357 = vmatprep.subr.bf16.mxu1 %v1501_v18  ;;  %v1534_v50 = vld [vmem:[%s2119_s0 + $0x198] sm:$0xff]   ;;  %v1536_v52 = vld [vmem:[%s2119_s0 + $0x1e0] sm:$0xff]   ;;  %v1542_v57 = vld [vmem:[%s2119_s0 + $0x1e8] sm:$0xff]  }
  0x13   :  { %v1537_v53 = vld [vmem:[%s2119_s0 + $0x120] sm:$0xff]   ;;  %v1539_v55 = vld [vmem:[%s2120_s1 + $0x14] ss:$8 sps:$4 sm:$0xff]   ;;  %v1543_v58 = vld [vmem:[%s2120_s1 + $0x10] ss:$8 sps:$4 sm:$0xff]  }
  0x14   :  { %1330 = vmatpush3.bf16.msra.mxu0 %v1502_v19  ;;  %v1538_v54 = vld [vmem:[%s2119_s0 + $0x1a0] sm:$0xff]   ;;  %v1544_v59 = vld [vmem:[%s2119_s0 + $0x128] sm:$0xff]   ;;  %v1546_v61 = vld [vmem:[%s2119_s0 + $0x170] sm:$0xff]  }
  0x15   :  { %1358 = vmatpush3.bf16.msra.mxu1 %v1503_v20  ;;  %1331 = vmatprep.subr.bf16.mxu0 %v1504_v21  ;;  %v1545_v60 = vld [vmem:[%s2119_s0 + $0x1a8] sm:$0xff]   ;;  %v1547_v62 = vld [vmem:[%s2119_s0 + $0x1f0] sm:$0xff]   ;;  %v1550_v1 = vld [vmem:[%s2119_s0 + $0x178] sm:$0xff]  }
  0x16   :  { %1359 = vmatprep.subr.bf16.mxu1 %v1505_v22  ;;  %v1548_v63 = vld [vmem:[%s2119_s0 + $0x130] sm:$0xff]   ;;  %v1551_v2 = vld [vmem:[%s2119_s0 + $0x1f8] sm:$0xff]   ;;  %v771_v5 = vld [vmem:[%s2121_s2] sm:$0xff] }
  0x17   :  { %v1549_v0 = vld [vmem:[%s2119_s0 + $0x1b0] sm:$0xff]   ;;  %v1552_v3 = vld [vmem:[%s2119_s0 + $0x138] sm:$0xff]   ;;  %777 = vperm.xlu0 %1482, %v771_v5   ;;  %v772_v7 = vld [vmem:[%s2121_s2 + $0x8] sm:$0xff] }
  0x18   :  { %1332 = vmatpush3.bf16.msra.mxu0 %v1506_v23  ;;  %v1553_v4 = vld [vmem:[%s2119_s0 + $0x1b8] sm:$0xff]   ;;  %v773_v6 = vld [vmem:[%s2121_s2 + $0x10] sm:$0xff]  ;;  %v1031_v9 = vld [vmem:[%s2122_s5] sm:$0xff] }
  0x19   :  { %1360 = vmatpush3.bf16.msra.mxu1 %v1507_v24  ;;  %1333 = vmatprep.subr.bf16.mxu0 %v1508_v25  ;;  %v774_v8 = vld [vmem:[%s2121_s2 + $0x18] sm:$0xff]  ;;  %v1032_v10 = vld [vmem:[%s2122_s5 + $0x8] sm:$0x3]  ;;  %v1022_v11 = vld [vmem:[%s2123_s4] sm:$0xff] }
  0x1a   :  { %1361 = vmatprep.subr.bf16.mxu1 %v1509_v26  ;;  %787 = vperm.xlu1 %1483, %v773_v6   ;;  %v1023_v12 = vld [vmem:[%s2123_s4 + $0x8] sm:$0xff]  ;;  %v1024_v13 = vld [vmem:[%s2123_s4 + $0x10] sm:$0xff]  ;;  %v1025_v15 = vld [vmem:[%s2123_s4 + $0x18] sm:$0xff] }
  0x1b   :  { %782 = vperm.xlu0 %1482, %v772_v7   ;;  %v1465_v14 = vpack.c.bf16 %v1023_v12, %v1022_v11  ;;  %v1469_v16 = vpack.c.bf16 %v1025_v15, %v1024_v13  ;;  %v1026_v17 = vld [vmem:[%s2123_s4 + $0x20] sm:$0xff]  ;;  %v1027_v18 = vld [vmem:[%s2123_s4 + $0x28] sm:$0xff]  ;;  %v1028_v20 = vld [vmem:[%s2123_s4 + $0x30] sm:$0xff] }
  0x1c   :  { %1334 = vmatpush3.bf16.msra.mxu0 %v1510_v27  ;;  %v1473_v19 = vpack.c.bf16 %v1027_v18, %v1026_v17  ;;  %v1029_v21 = vld [vmem:[%s2123_s4 + $0x38] sm:$0xff]  ;;  %v1030_v23 = vld [vmem:[%s2123_s4 + $0x40] sm:$0xff]  ;;  %v812_v17 = vld [vmem:[%s2124_s3 + $0x8] sm:$0xff] }
  0x1d   :  { %1362 = vmatpush3.bf16.msra.mxu1 %v1511_v28  ;;  %1335 = vmatprep.subr.bf16.mxu0 %v1512_v29  ;;  %v1477_v22 = vpack.c.bf16 %v1029_v21, %v1028_v20  ;;  %v815_v12 = vld [vmem:[%s2124_s3 + $0x20] sm:$0xff] }
  0x1e   :  { %1363 = vmatprep.subr.bf16.mxu1 %v1513_v30  ;;  %792 = vperm.xlu1 %1483, %v774_v8   ;;  %v811_v8 = vld [vmem:[%s2124_s3] sm:$0xff] }
  0x1f   :  { %1035 = vperm.xlu0 %1482, %v1031_v9   ;;  %v819_v21 = vld [vmem:[%s2124_s3 + $0x40] sm:$0xff] }
  0x20   :  { %1336 = vmatpush3.bf16.msra.mxu0 %v1514_v31 }
  0x21   :  { %1364 = vmatpush3.bf16.msra.mxu1 %v1515_v32  ;;  %1377 = vmatprep.subr.bf16.mxu0 %v1519_v35 }
  0x22   :  { %1405 = vmatprep.subr.bf16.mxu1 %v1520_v36  ;;  %1040 = vperm.xlu1 %1483, %v1032_v10  }
  0x23   :  { %209 = vmatmul.mubr.bf16.vlgmr.msra.gmra.mrb[0].mxu0 %v1694_v34 }
  0x24   :  { %387 = vmatmul.mubr.bf16.vlgmr.msra.gmra.mrb[0].mxu1 %v1694_v34  ;;  %1378 = vmatpush3.bf16.msra.mxu0 %v1521_v37 }
  0x25   :  { %1406 = vmatpush3.bf16.msra.mxu1 %v1522_v38  ;;  %1379 = vmatprep.subr.bf16.mxu0 %v1523_v39 }
  0x26   :  { %1407 = vmatprep.subr.bf16.mxu1 %v1524_v40  ;;  %216 = vmatprep.mubr.bf16.mxu0 %v1539_v55 }
  0x27   :  { %394 = vmatprep.mubr.bf16.mxu1 %v1539_v55 }
  0x28   :  { %1380 = vmatpush3.bf16.msra.mxu0 %v1525_v41 }
  0x29   :  { %1408 = vmatpush3.bf16.msra.mxu1 %v1526_v42  ;;  %1381 = vmatprep.subr.bf16.mxu0 %v1527_v43 }
  0x2a   :  { %1409 = vmatprep.subr.bf16.mxu1 %v1528_v44 }
  0x2b   :  { %217 = vmatmul.mubr.bf16.gmra.mrb[4].mxu0 %v1543_v58 }
  0x2c   :  { %1382 = vmatpush3.bf16.msra.mxu0 %v1529_v45  ;;  %395 = vmatmul.mubr.bf16.gmra.mrb[4].mxu1 %v1543_v58 }
  0x2d   :  { %1410 = vmatpush3.bf16.msra.mxu1 %v1530_v46  ;;  %1383 = vmatprep.subr.bf16.mxu0 %v1531_v47 }
  0x2e   :  { %1411 = vmatprep.subr.bf16.mxu1 %v1532_v48  ;;  %568 = vmatprep.mubr.bf16.mxu0 %v1689_v33 }
  0x2f   :  { %750 = vmatprep.mubr.bf16.mxu1 %v1689_v33 }
  0x30   :  { %1384 = vmatpush3.bf16.msra.mxu0 %v1533_v49 }
  0x31   :  { %1412 = vmatpush3.bf16.msra.mxu1 %v1534_v50  ;;  %1385 = vmatprep.subr.bf16.mxu0 %v1535_v51 }
  0x32   :  { %1413 = vmatprep.subr.bf16.mxu1 %v1536_v52 }
  0x34   :  { %1386 = vmatpush3.bf16.msra.mxu0 %v1537_v53 }
  0x35   :  { %1414 = vmatpush3.bf16.msra.mxu1 %v1538_v54  ;;  %1387 = vmatprep.subr.bf16.mxu0 %v1541_v56 }
  0x36   :  { %1415 = vmatprep.subr.bf16.mxu1 %v1542_v57 }
  0x38   :  { %1388 = vmatpush3.bf16.msra.mxu0 %v1544_v59 }
  0x39   :  { %1416 = vmatpush3.bf16.msra.mxu1 %v1545_v60  ;;  %1389 = vmatprep.subr.bf16.mxu0 %v1546_v61 }
  0x3a   :  { %1417 = vmatprep.subr.bf16.mxu1 %v1547_v62 }
  0x3c   :  { %1390 = vmatpush3.bf16.msra.mxu0 %v1548_v63 }
  0x3d   :  { %1418 = vmatpush3.bf16.msra.mxu1 %v1549_v0  ;;  %1391 = vmatprep.subr.bf16.mxu0 %v1550_v1 }
  0x3e   :  { %1419 = vmatprep.subr.bf16.mxu1 %v1551_v2 }
  0x40   :  { %1392 = vmatpush3.bf16.msra.mxu0 %v1552_v3 }
  0x41   :  { %1420 = vmatpush3.bf16.msra.mxu1 %v1553_v4  ;;  %1466 = vmatprep.subr.bf16.mxu0 %v1465_v14 }
  0x43   :  { %569 = vmatmul.mubr.bf16.vlgmr.msra.gmra.mrb[8].mxu0 %v1694_v34 }
  0x44   :  { %751 = vmatmul.mubr.bf16.vlgmr.msra.gmra.mrb[8].mxu1 %v1694_v34  ;;  %576 = vmatprep.mubr.bf16.mxu0 %v1539_v55 }
  0x45   :  { %758 = vmatprep.mubr.bf16.mxu1 %v1539_v55  ;;  %1468 = vmatpush3.bf16.msra.mxu0 %v1465_v14 }
  0x46   :  { %1470 = vmatprep.subr.bf16.mxu0 %v1469_v16 }
  0x49   :  { %1472 = vmatpush3.bf16.msra.mxu0 %v1469_v16 }
  0x4a   :  { %1474 = vmatprep.subr.bf16.mxu0 %v1473_v19 }
  0x4b   :  { %577 = vmatmul.mubr.bf16.gmra.mrb[12].mxu0 %v1543_v58 }
  0x4c   :  { %759 = vmatmul.mubr.bf16.gmra.mrb[12].mxu1 %v1543_v58 }
  0x4d   :  { %1476 = vmatpush3.bf16.msra.mxu0 %v1473_v19 }
  0x4e   :  { %1478 = vmatprep.subr.bf16.mxu0 %v1477_v22 }
  0x51   :  { %1480 = vmatpush3.bf16.msra.mxu0 %v1477_v22  ;;  %v823_v22 = vld [vmem:[%s2124_s3 + $0x60] sm:$0xff] }
  0x52   :  { %1460 = vmatprep.subr.mxu0 %v1030_v23 }
  0x55   :  { %1461 = vmatpush3.msra.mxu0 %v1030_v23 }
  0x96   :  { %v778_v53 = vpop.permute.xlu0 %777 }
  0x9a   :  { %v783_v5 = vpop.permute.xlu0 %782 }
  0xf6   :  { %v1337_v24 = vpop.f32.mrb[0].mxu0 }
  0xf7   :  { %v1365_v25 = vpop.f32.mrb[0].mxu1  ;;  %v1338_v26 = vpop.f32.mrb[1].mxu0 }
  0xf8   :  { %v1339_v27 = vadd.f32 %v1338_v26, %v1337_v24  ;;  %v1366_v28 = vpop.f32.mrb[1].mxu1  ;;  %v1340_v29 = vpop.f32.mrb[2].mxu0  ;;  %v820_v26 = vld [vmem:[%s2124_s3 + $0x48] sm:$0xff] }
  0xf9   :  { %v1367_v30 = vadd.f32 %v1366_v28, %v1365_v25  ;;  %v1368_v31 = vpop.f32.mrb[2].mxu1  ;;  %v1341_v32 = vpop.f32.mrb[3].mxu0  ;;  %v816_v25 = vld [vmem:[%s2124_s3 + $0x28] sm:$0xff] }
  0xfa   :  { %v1342_v33 = vadd.f32 %v1341_v32, %v1340_v29  ;;  %v1369_v34 = vpop.f32.mrb[3].mxu1  ;;  %v788_v24 = vpop.permute.xlu1 %787 }
  0xfb   :  { %v403_v35 = vmax.f32 %v1339_v27, %v1367_v30  ;;  %v1370_v36 = vadd.f32 %v1369_v34, %v1368_v31  ;;  %v824_v34 = vld [vmem:[%s2124_s3 + $0x68] sm:$0xff] }
  0xfd   :  { %v404_v37 = vmax.f32 %v1342_v33, %v1370_v36  ;;  %v828_v36 = vld [vmem:[%s2124_s3 + $0x88] sm:$0xff] }
  0xfe   :  { %v1343_v38 = vpop.f32.mrb[4].mxu0 }
  0xff   :  { %v1371_v39 = vpop.f32.mrb[4].mxu1  ;;  %v1344_v40 = vpop.f32.mrb[5].mxu0 }
 0x100   :  { %v1345_v41 = vadd.f32 %v1344_v40, %v1343_v38  ;;  %v1372_v42 = vpop.f32.mrb[5].mxu1  ;;  %v1346_v43 = vpop.f32.mrb[6].mxu0 }
 0x101   :  { %v1373_v44 = vadd.f32 %v1372_v42, %v1371_v39  ;;  %v1374_v45 = vpop.f32.mrb[6].mxu1  ;;  %v1347_v46 = vpop.f32.mrb[7].mxu0  ;;  %v831_v39 = vld [vmem:[%s2124_s3 + $0xa0] sm:$0xff] }
 0x102   :  { %v1851_v47 = vadd.f32 %v1347_v46, %v1346_v43  ;;  %v1375_v48 = vpop.f32.mrb[7].mxu1  ;;  %v832_v46 = vld [vmem:[%s2124_s3 + $0xa8] sm:$0xff] }
 0x103   :  { %v405_v49 = vmax.f32 %v1345_v41, %v1373_v44  ;;  %v1853_v50 = vadd.f32 %v1375_v48, %v1374_v45 }
 0x105   :  { %v406_v51 = vmax.f32 %v1851_v47, %v1853_v50  ;;  %v835_v47 = vld [vmem:[%s2124_s3 + $0xc0] sm:$0xff] }
 0x106   :  { %v839_v50 = vld [vmem:[%s2124_s3 + $0xe0] sm:$0xff] }
 0x116   :  { %v1393_v52 = vpop.f32.mrb[8].mxu0 }
 0x117   :  { %v1421_v54 = vpop.f32.mrb[8].mxu1  ;;  %v1394_v55 = vpop.f32.mrb[9].mxu0 }
 0x118   :  { %v1395_v56 = vadd.f32 %v1394_v55, %v1393_v52  ;;  %v1422_v57 = vpop.f32.mrb[9].mxu1  ;;  %v1396_v58 = vpop.f32.mrb[10].mxu0 }
 0x119   :  { %v1423_v59 = vadd.f32 %v1422_v57, %v1421_v54  ;;  %v1424_v60 = vpop.f32.mrb[10].mxu1  ;;  %v1397_v61 = vpop.f32.mrb[11].mxu0 }
 0x11a   :  { %v585_v62 = vmax.f32 %v403_v35, %v1395_v56  ;;  %v1398_v63 = vadd.f32 %v1397_v61, %v1396_v58  ;;  %v1425_v0 = vpop.f32.mrb[11].mxu1  ;;  %v827_v35 = vld [vmem:[%s2124_s3 + $0x80] sm:$0xff]  ;;  %v813_v58 = vld [vmem:[%s2124_s3 + $0x10] sm:$0xff] }
 0x11b   :  { %v1426_v1 = vadd.f32 %v1425_v0, %v1424_v60  ;;  %v793_v60 = vpop.permute.xlu1 %792  ;;  %v825_v0 = vld [vmem:[%s2124_s3 + $0x70] sm:$0xff] }
 0x11c   :  { %v767_v2 = vmax.f32 %v585_v62, %v1423_v59  ;;  %v586_v3 = vmax.f32 %v404_v37, %v1398_v63  ;;  %v817_v62 = vld [vmem:[%s2124_s3 + $0x30] sm:$0xff] }
 0x11d   :  { %v821_v63 = vld [vmem:[%s2124_s3 + $0x50] sm:$0xff] }
 0x11e   :  { %v795_v4 = vadd.f32 %v778_v53, %v767_v2  ;;  %v768_v6 = vmax.f32 %v586_v3, %v1426_v1  ;;  %v1399_v7 = vpop.f32.mrb[12].mxu0 }
 0x11f   :  { %v1427_v9 = vpop.f32.mrb[12].mxu1  ;;  %v1400_v10 = vpop.f32.mrb[13].mxu0 }
 0x120   :  { %vm799_vm0 = vcmp.ge.f32.partialorder %v795_v4, 0.0  ;;  %v803_v11 = vmul.f32 0.1, %v795_v4  ;;  %v796_v13 = vadd.f32 %v783_v5, %v768_v6  ;;  %v1401_v14 = vadd.f32 %v1400_v10, %v1399_v7  ;;  %v1428_v15 = vpop.f32.mrb[13].mxu1  ;;  %v1402_v16 = vpop.f32.mrb[14].mxu0  ;;  %v829_v5 = vld [vmem:[%s2124_s3 + $0x90] sm:$0xff] }
 0x121   :  { %v1429_v18 = vadd.f32 %v1428_v15, %v1427_v9  ;;  %v1430_v19 = vpop.f32.mrb[14].mxu1  ;;  %v1403_v20 = vpop.f32.mrb[15].mxu0  ;;  %v833_v6 = vld [vmem:[%s2124_s3 + $0xb0] sm:$0xff] }
 0x122   :  { %v1872_v23 = vsel %vm799_vm0, %v795_v4, %v803_v11  ;;  %vm800_vm2 = vcmp.ge.f32.partialorder %v796_v13, 0.0  ;;  %v804_v27 = vmul.f32 0.1, %v796_v13  ;;  %v587_v28 = vmax.f32 %v405_v49, %v1401_v14  ;;  %v1431_v29 = vpop.f32.mrb[15].mxu1  ;;  %v836_v49 = vld [vmem:[%s2124_s3 + $0xc8] sm:$0xff]  ;;  %v814_v4 = vld [vmem:[%s2124_s3 + $0x18] sm:$0xff] }
 0x123   :  { %v851_v30 = vmul.f32 %v811_v8, %v1872_v23  ;;  %v855_v31 = vmul.f32 %v815_v12, %v1872_v23  ;;  %v1404_v32 = vadd.f32 %v1403_v20, %v1402_v16  ;;  %v1432_v33 = vadd.f32 %v1431_v29, %v1430_v19  ;;  %v818_v11 = vld [vmem:[%s2124_s3 + $0x38] sm:$0xff]  ;;  %v837_v12 = vld [vmem:[%s2124_s3 + $0xd0] sm:$0xff] }
 0x124   :  { %v1891_v37 = vsel %vm800_vm2, %v796_v13, %v804_v27  ;;  %v769_v38 = vmax.f32 %v587_v28, %v1429_v18  ;;  %v859_v40 = vmul.f32 %v819_v21, %v1872_v23  ;;  %v1898_v41 = vmul.f32 %v823_v22, %v1872_v23  ;;  %v841_v13 = vld [vmem:[%s2124_s3 + $0xf0] sm:$0xff]  ;;  %v822_v18 = vld [vmem:[%s2124_s3 + $0x58] sm:$0xff] }
 0x125   :  { %v852_v42 = vmul.f32 %v812_v17, %v1891_v37  ;;  %v856_v43 = vmul.f32 %v816_v25, %v1891_v37  ;;  %v1903_v44 = vmul.f32 %v820_v26, %v1891_v37  ;;  %v588_v45 = vmax.f32 %v406_v51, %v1404_v32  ;;  %v840_v51 = vld [vmem:[%s2124_s3 + $0xe8] sm:$0xff]  ;;  %v826_v19 = vld [vmem:[%s2124_s3 + $0x78] sm:$0xff] }
 0x126   :  { %v797_v48 = vadd.f32 %v788_v24, %v769_v38  ;;  %v1921_v52 = vmul.f32 %v824_v34, %v1891_v37  ;;  %v1924_v53 = vmul.f32 %v827_v35, %v1872_v23  ;;  %v1927_v54 = vmul.f32 %v828_v36, %v1891_v37  ;;  %v830_v20 = vld [vmem:[%s2124_s3 + $0x98] sm:$0xff] }
 0x127   :  { %v893_v55 = vsel %vm891_vm1, %v852_v42, 0.0  ;;  %v906_v56 = vsel %vm891_vm1, %v856_v43, 0.0  ;;  %v770_v57 = vmax.f32 %v588_v45, %v1432_v33  ;;  %v1935_v59 = vmul.f32 %v831_v39, %v1872_v23  ;;  %v834_v24 = vld [vmem:[%s2124_s3 + $0xb8] sm:$0xff] }
 0x128   :  { %vm801_vm3 = vcmp.ge.f32.partialorder %v797_v48, 0.0  ;;  %v805_v61 = vmul.f32 0.1, %v797_v48  ;;  %v1947_v1 = vmul.f32 %v832_v46, %v1891_v37  ;;  %v1950_v2 = vmul.f32 %v835_v47, %v1872_v23  ;;  %v838_v25 = vld [vmem:[%s2124_s3 + $0xd8] sm:$0xff] }
 0x129   :  { %v798_v3 = vadd.f32 %v793_v60, %v770_v57  ;;  %v1962_v7 = vmul.f32 %v836_v49, %v1891_v37  ;;  %v1965_v8 = vmul.f32 %v839_v50, %v1872_v23  ;;  %v1968_v9 = vmul.f32 %v840_v51, %v1891_v37  ;;  %v842_v26 = vld [vmem:[%s2124_s3 + $0xf8] sm:$0xff] }
 0x12a   :  { %v1970_v10 = vsel %vm801_vm3, %v797_v48, %v805_v61  ;;  %v892_v14 = vsel %vm891_vm1, %v851_v30, 0.0  ;;  %v905_v15 = vsel %vm891_vm1, %v855_v31, 0.0  ;;  %v918_v16 = vsel %vm891_vm1, %v859_v40, 0.0 }
 0x12b   :  { %vm802_vm4 = vcmp.ge.f32.partialorder %v798_v3, 0.0  ;;  %v806_v17 = vmul.f32 0.1, %v798_v3  ;;  %v853_v21 = vmul.f32 %v813_v58, %v1970_v10  ;;  %v857_v22 = vmul.f32 %v817_v62, %v1970_v10 }
 0x12c   :  { %v861_v27 = vmul.f32 %v821_v63, %v1970_v10  ;;  %v865_v28 = vmul.f32 %v825_v0, %v1970_v10  ;;  %v869_v29 = vmul.f32 %v829_v5, %v1970_v10  ;;  %v873_v30 = vmul.f32 %v833_v6, %v1970_v10 }
 0x12d   :  { %v2008_v31 = vsel %vm802_vm4, %v798_v3, %v806_v17  ;;  %v877_v32 = vmul.f32 %v837_v12, %v1970_v10  ;;  %v2012_v33 = vmul.f32 %v841_v13, %v1970_v10  ;;  %v894_v34 = vadd.f32 %v893_v55, %v892_v14 }
 0x12e   :  { %v854_v35 = vmul.f32 %v814_v4, %v2008_v31  ;;  %v858_v36 = vmul.f32 %v818_v11, %v2008_v31  ;;  %v862_v38 = vmul.f32 %v822_v18, %v2008_v31  ;;  %v866_v39 = vmul.f32 %v826_v19, %v2008_v31 }
 0x12f   :  { %v870_v40 = vmul.f32 %v830_v20, %v2008_v31  ;;  %v874_v42 = vmul.f32 %v834_v24, %v2008_v31  ;;  %v878_v43 = vmul.f32 %v838_v25, %v2008_v31  ;;  %v2022_v45 = vmul.f32 %v842_v26, %v2008_v31 }
 0x130   :  { %v895_v46 = vsel %vm891_vm1, %v853_v21, 0.0  ;;  %v897_v47 = vsel %vm891_vm1, %v854_v35, 0.0  ;;  %v907_v48 = vadd.f32 %v906_v56, %v905_v15  ;;  %v908_v49 = vsel %vm891_vm1, %v857_v22, 0.0 }
 0x131   :  { %v896_v50 = vadd.f32 %v895_v46, %v894_v34  ;;  %v910_v51 = vsel %vm891_vm1, %v858_v36, 0.0  ;;  %v919_v55 = vsel %vm891_vm1, %v1903_v44, 0.0  ;;  %v921_v57 = vsel %vm891_vm1, %v861_v27, 0.0 }
 0x132   :  { %v909_v58 = vadd.f32 %v908_v49, %v907_v48  ;;  %v920_v60 = vadd.f32 %v919_v55, %v918_v16  ;;  %v923_v61 = vsel %vm891_vm1, %v862_v38, 0.0  ;;  %v931_v62 = vsel %vm891_vm1, %v1898_v41, 0.0 }
 0x133   :  { %v898_v63 = vadd.f32 %v897_v47, %v896_v50  ;;  %v932_v56 = vsel %vm891_vm1, %v1921_v52, 0.0  ;;  %v934_v0 = vsel %vm891_vm1, %v865_v28, 0.0  ;;  %v936_v3 = vsel %vm891_vm1, %v866_v39, 0.0 }
 0x134   :  { %v911_v4 = vadd.f32 %v910_v51, %v909_v58  ;;  %v922_v5 = vadd.f32 %v921_v57, %v920_v60  ;;  %v933_v44 = vadd.f32 %v932_v56, %v931_v62  ;;  %v944_v6 = vsel %vm891_vm1, %v1924_v53, 0.0 }
 0x135   :  { %v899_v11 = vrot.slane %v898_v63, 4  ;;  %v945_v12 = vsel %vm891_vm1, %v1927_v54, 0.0  ;;  %v947_v41 = vsel %vm891_vm1, %v869_v29, 0.0  ;;  %v949_v13 = vsel %vm891_vm1, %v870_v40, 0.0 }
 0x136   :  { %v912_v14 = vrot.slane %v911_v4, 4  ;;  %v924_v52 = vadd.f32 %v923_v61, %v922_v5  ;;  %v935_v15 = vadd.f32 %v934_v0, %v933_v44  ;;  %v946_v16 = vadd.f32 %v945_v12, %v944_v6 }
 0x137   :  { %v900_v17 = vadd.f32 %v899_v11, %v898_v63  ;;  %v957_v18 = vsel %vm891_vm1, %v1935_v59, 0.0  ;;  %v958_v19 = vsel %vm891_vm1, %v1947_v1, 0.0  ;;  %v960_v53 = vsel %vm891_vm1, %v873_v30, 0.0  ;;  %v844_v11 = vld [vmem:[%s2124_s3 + $0x108] sm:$0xff] }
 0x138   :  { %v913_v20 = vadd.f32 %v912_v14, %v911_v4  ;;  %v925_v21 = vrot.slane %v924_v52, 4  ;;  %v937_v54 = vadd.f32 %v936_v3, %v935_v15  ;;  %v948_v22 = vadd.f32 %v947_v41, %v946_v16 }
 0x139   :  { %v901_v24 = vrot.slane %v900_v17, 2  ;;  %v959_v25 = vadd.f32 %v958_v19, %v957_v18  ;;  %v962_v26 = vsel %vm891_vm1, %v874_v42, 0.0  ;;  %v970_v27 = vsel %vm891_vm1, %v1950_v2, 0.0  ;;  %v847_v18 = vld [vmem:[%s2124_s3 + $0x120] sm:$0xff] }
 0x13a   :  { %v914_v28 = vrot.slane %v913_v20, 2  ;;  %v926_v59 = vadd.f32 %v925_v21, %v924_v52  ;;  %v938_v29 = vrot.slane %v937_v54, 4  ;;  %v950_v34 = vadd.f32 %v949_v13, %v948_v22 }
 0x13b   :  { %v902_v1 = vadd.f32 %v901_v24, %v900_v17  ;;  %v961_v35 = vadd.f32 %v960_v53, %v959_v25  ;;  %v971_v30 = vsel %vm891_vm1, %v1962_v7, 0.0  ;;  %v973_v36 = vsel %vm891_vm1, %v877_v32, 0.0  ;;  %v846_v17 = vld [vmem:[%s2124_s3 + $0x118] sm:$0xff]  ;;  %v848_v53 = vld [vmem:[%s2124_s3 + $0x128] sm:$0xff] }
 0x13c   :  { %v915_v38 = vadd.f32 %v914_v28, %v913_v20  ;;  %v927_v39 = vrot.slane %v926_v59, 2  ;;  %v939_v40 = vadd.f32 %v938_v29, %v937_v54  ;;  %v951_v42 = vrot.slane %v950_v34, 4  ;;  %v849_v20 = vld [vmem:[%s2124_s3 + $0x130] sm:$0xff] }
 0x13d   :  { %v903_v46 = vrot.slane %v902_v1, 1  ;;  %v963_v47 = vadd.f32 %v962_v26, %v961_v35  ;;  %v972_v2 = vadd.f32 %v971_v30, %v970_v27  ;;  %v975_v48 = vsel %vm891_vm1, %v878_v43, 0.0  ;;  %v850_v26 = vld [vmem:[%s2124_s3 + $0x138] sm:$0xff] }
 0x13e   :  { %v916_v49 = vrot.slane %v915_v38, 1  ;;  %v928_v50 = vadd.f32 %v927_v39, %v926_v59  ;;  %v940_v51 = vrot.slane %v939_v40, 2  ;;  %v952_v55 = vadd.f32 %v951_v42, %v950_v34 }
 0x13f   :  { %v904_v57 = vadd.f32 %v903_v46, %v902_v1  ;;  %v964_v58 = vrot.slane %v963_v47, 4  ;;  %v974_v7 = vadd.f32 %v973_v36, %v972_v2  ;;  %v983_v32 = vsel %vm891_vm1, %v1965_v8, 0.0  ;;  %v843_v8 = vld [vmem:[%s2124_s3 + $0x100] sm:$0xff] }
 0x140   :  { %v917_v60 = vadd.f32 %v916_v49, %v915_v38  ;;  %v929_v61 = vrot.slane %v928_v50, 1  ;;  %v941_v62 = vadd.f32 %v940_v51, %v939_v40  ;;  %v953_v63 = vrot.slane %v952_v55, 2 }
 0x141   :  { %v965_v56 = vadd.f32 %v964_v58, %v963_v47  ;;  %v976_v0 = vadd.f32 %v975_v48, %v974_v7  ;;  %v984_v43 = vsel %vm891_vm1, %v1968_v9, 0.0  ;;  %v986_v3 = vsel %vm891_vm1, %v2012_v33, 0.0  ;;  %v845_v33 = vld [vmem:[%s2124_s3 + $0x110] sm:$0xff] }
 0x142   :  { %v930_v4 = vadd.f32 %v929_v61, %v928_v50  ;;  %v942_v5 = vrot.slane %v941_v62, 1  ;;  %v954_v44 = vadd.f32 %v953_v63, %v952_v55  ;;  %v985_v6 = vadd.f32 %v984_v43, %v983_v32 }
 0x143   :  { %v966_v12 = vrot.slane %v965_v56, 2  ;;  %v977_v41 = vrot.slane %v976_v0, 4  ;;  %v988_v9 = vsel %vm891_vm1, %v2022_v45, 0.0  ;;  %v1054_v13 = vsel %vm1053_vm5, %v917_v60, %v904_v57 }
 0x144   :  { %v943_v14 = vadd.f32 %v942_v5, %v941_v62  ;;  %v955_v52 = vrot.slane %v954_v44, 1  ;;  %v987_v15 = vadd.f32 %v986_v3, %v985_v6  ;;  %v1056_v16 = vsel %vm1055_vm6, %v930_v4, %v1054_v13 }
 0x145   :  { %v967_v45 = vadd.f32 %v966_v12, %v965_v56  ;;  %v978_v19 = vadd.f32 %v977_v41, %v976_v0  ;;  %v883_v21 = vmul.f32 %v843_v8, %v1872_v23  ;;  %v884_v54 = vmul.f32 %v844_v11, %v1891_v37 }
 0x146   :  { %v956_v22 = vadd.f32 %v955_v52, %v954_v44  ;;  %v989_v24 = vadd.f32 %v988_v9, %v987_v15  ;;  %v1058_v25 = vsel %vm1057_vm7, %v943_v14, %v1056_v16  ;;  %v885_v27 = vmul.f32 %v845_v33, %v1970_v10  ;;  %v1041_v52 = vpop.permute.xlu1 %1040  ;;  %v1036_v16 = vpop.permute.xlu0 %1035 }
 0x147   :  { %v968_v28 = vrot.slane %v967_v45, 1  ;;  %v979_v59 = vrot.slane %v978_v19, 2  ;;  %v886_v29 = vmul.f32 %v846_v17, %v2008_v31  ;;  %v887_v34 = vmul.f32 %v847_v18, %v1872_v23 }
 0x148   :  { %v990_v1 = vrot.slane %v989_v24, 4  ;;  %v1060_v35 = vsel %vm1059_vm8, %v956_v22, %v1058_v25  ;;  %v888_v30 = vmul.f32 %v848_v53, %v1891_v37  ;;  %v889_v36 = vmul.f32 %v849_v20, %v1970_v10 }
 0x149   :  { %v969_v38 = vadd.f32 %v968_v28, %v967_v45  ;;  %v980_v39 = vadd.f32 %v979_v59, %v978_v19  ;;  %v890_v40 = vmul.f32 %v850_v26, %v2008_v31  ;;  %v996_v46 = vsel %vm891_vm1, %v883_v21, 0.0 }
 0x14a   :  { %v991_v42 = vadd.f32 %v990_v1, %v989_v24  ;;  %v997_v47 = vsel %vm891_vm1, %v884_v54, 0.0  ;;  %v999_v2 = vsel %vm891_vm1, %v885_v27, 0.0  ;;  %v1001_v37 = vsel %vm891_vm1, %v886_v29, 0.0 }
 0x14b   :  { %v981_v23 = vrot.slane %v980_v39, 1  ;;  %v1062_v48 = vsel %vm1061_vm9, %v969_v38, %v1060_v35  ;;  %v998_v49 = vadd.f32 %v997_v47, %v996_v46  ;;  %v1009_v10 = vsel %vm891_vm1, %v887_v34, 0.0 }
 0x14c   :  { %v992_v50 = vrot.slane %v991_v42, 2  ;;  %v1010_v51 = vsel %vm891_vm1, %v888_v30, 0.0  ;;  %v1012_v31 = vsel %vm891_vm1, %v889_v36, 0.0  ;;  %v1014_v32 = vsel %vm891_vm1, %v890_v40, 0.0 }
 0x14d   :  { %v982_v55 = vadd.f32 %v981_v23, %v980_v39  ;;  %v1000_v57 = vadd.f32 %v999_v2, %v998_v49  ;;  %v1011_v58 = vadd.f32 %v1010_v51, %v1009_v10 }
 0x14e   :  { %v993_v7 = vadd.f32 %v992_v50, %v991_v42 }
 0x14f   :  { %v1064_v60 = vsel %vm1063_vm10, %v982_v55, %v1062_v48  ;;  %v1002_v61 = vadd.f32 %v1001_v37, %v1000_v57  ;;  %v1013_v62 = vadd.f32 %v1012_v31, %v1011_v58 }
 0x150   :  { %v994_v63 = vrot.slane %v993_v7, 1 }
 0x151   :  { %v1003_v56 = vrot.slane %v1002_v61, 4  ;;  %v1015_v0 = vadd.f32 %v1014_v32, %v1013_v62 }
 0x152   :  { %v995_v43 = vadd.f32 %v994_v63, %v993_v7 }
 0x153   :  { %v1004_v3 = vadd.f32 %v1003_v56, %v1002_v61  ;;  %v1016_v4 = vrot.slane %v1015_v0, 4 }
 0x154   :  { %v1066_v5 = vsel %vm1065_vm11, %v995_v43, %v1064_v60 }
 0x155   :  { %1462 = vmatprep.mubr.msk.f32.mxu0 %vm891_vm1, %v1066_v5  ;;  %v1005_v44 = vrot.slane %v1004_v3, 2  ;;  %v1017_v6 = vadd.f32 %v1016_v4, %v1015_v0 }
 0x157   :  { %v1006_v8 = vadd.f32 %v1005_v44, %v1004_v3  ;;  %v1018_v11 = vrot.slane %v1017_v6, 2 }
 0x159   :  { %v1007_v12 = vrot.slane %v1006_v8, 1  ;;  %v1019_v41 = vadd.f32 %v1018_v11, %v1017_v6 }
 0x15b   :  { %v1008_v9 = vadd.f32 %v1007_v12, %v1006_v8  ;;  %v1020_v13 = vrot.slane %v1019_v41, 1 }
 0x15d   :  { %v1021_v33 = vadd.f32 %v1020_v13, %v1019_v41 }
 0x15f   :  { %v1067_v14 = vsel %vm1053_vm5, %v1021_v33, %v1008_v9 }
 0x160   :  { %1463 = vmatmul.mubr.msk.f32.vlgmr.msra.gmra.mrb[16].mxu0 %vm891_vm1, %v1067_v14 }
 0x233   :  { %v1464_v15 = vpop.f32.mrb[16].mxu0 }
 0x234   :  { %v1144_v17 = vadd.f32 %v1464_v15, %v1041_v52  ;;  %v1138_v18 = vpop.f32.mrb[17].mxu0 }
 0x235   :  { %v1139_v45 = vadd.f32 %v1138_v18, %v1036_v16 }
 0x236   :  { %1150 = vst.msk [vmem:[%s2125_s6 + $0x8] sm:$0x3] %vm1149_vm12, %v1144_v17 }
 0x237   :  { %1148 = vst.msk [vmem:[%s2125_s6] sm:$0xff] %vm1147_vm13, %v1139_v45 }

</bundles_post_ra>
